<compile_context>
chip_gen: v7x
topology: tpu7x:2x2x1
jax: 0.10.0
libtpu: 0.0.40
codegen_flags: <defaults>
</compile_context>

<pallas_src>
import jax
import jax.numpy as jnp
from jax import lax
from jax.experimental import pallas as pl
from jax.experimental.pallas import tpu as pltpu

_TILE_TARGET = 8 << 20        # main-input block target bytes (v5e/v6e/unknown)
_TILE_TARGET_V7 = 4 << 20     # v7x: 64 MiB VMEM / TC, keep blocks smaller
_VMEM_CAP = 64 << 20
_VMEM_CAP_V7 = 44 << 20
_VMEM_FLOOR = 32 << 20


def _tpu_generation():
    """Best-effort TPU generation detection (0 = unknown -> conservative)."""
    try:
        kind = jax.devices()[0].device_kind.lower()
    except Exception:
        return 0
    if "7" in kind:
        return 7
    if "v6" in kind or "6e" in kind:
        return 6
    if "v5" in kind:
        return 5
    return 0


def _largest_divisor_leq(n, cap):
    cap = int(max(1, min(n, cap)))
    for d in range(cap, 0, -1):
        if n % d == 0:
            return d
    return 1


# ----------------------------------------------------------------------------
# Conv path: Conv2d(Cin, Cout, 3, stride=2, padding=1)
# ----------------------------------------------------------------------------
def _conv_down_kernel(x_ref, xh_ref, wa_ref, wc_ref, ws_ref, b_ref, o_ref):
    """One (batch, output-row-tile) step of the 3x3 stride-2 conv.

    x_ref : (1, TH, Wo+1, 4*Cin)   space-to-depth plane rows i .. i+TH-1
    xh_ref: (1, 1,  Wo+1, 4*Cin)   halo plane row i+TH
    wa_ref: (4*Cin, Cout)          taps (0,0)(0,1)(1,0)(1,1)
    wc_ref: (2*Cin, Cout)          taps (2,0)(2,1)    (next plane row, K=2*Cin)
    ws_ref: (3, Cin, Cout)         taps (0,2),(1,2),(2,2)  (shifted column)
    b_ref : (1, Cout)              bias (f32)
    o_ref : (1, TH, Wo, Cout)
    """
    _, TH, W1, C4 = x_ref.shape
    Cin = C4 // 4
    _, _, Wo, Cout = o_ref.shape
    R = TH * W1

    xf = x_ref[0].reshape(R, C4)                    # (R, 4*Cin)
    xh = xh_ref[0, 0]                               # (W1, 4*Cin)

    f32 = jnp.float32
    # "cur" plane-row contributions.
    y_a = jnp.dot(xf, wa_ref[...], preferred_element_type=f32)
    y_b = (jnp.dot(xf[:, :Cin], ws_ref[0], preferred_element_type=f32) +
           jnp.dot(xf[:, 2 * Cin:3 * Cin], ws_ref[1], preferred_element_type=f32))

    # "next" plane-row contributions: halo row always, interior rows only if TH>1.
    y_ch = jnp.dot(xh[:, :2 * Cin], wc_ref[...], preferred_element_type=f32)
    y_dh = jnp.dot(xh[:, :Cin], ws_ref[2], preferred_element_type=f32)
    if TH > 1:
        y_c = jnp.dot(xf[:, :2 * Cin], wc_ref[...], preferred_element_type=f32)
        y_d = jnp.dot(xf[:, :Cin], ws_ref[2], preferred_element_type=f32)
        nxt_u = jnp.concatenate([y_c[W1:], y_ch], axis=0)   # Cout-wide shift only
        nxt_s = jnp.concatenate([y_d[W1:], y_dh], axis=0)
    else:
        nxt_u, nxt_s = y_ch, y_dh

    u = (y_a + nxt_u).reshape(TH, W1, Cout)          # unshifted-column part
    s = (y_b + nxt_s).reshape(TH, W1, Cout)          # +1-column part
    out = u[:, :Wo, :] + s[:, 1:Wo + 1, :] + b_ref[...]
    o_ref[0] = out.astype(o_ref.dtype)


def downsample_conv(x_nchw, weight, bias, *, out_layout="NCHW", compute_dtype=None):
    """Conv2d(Cin, Cout, 3, stride=2, padding=1) on an NCHW input.

    x_nchw: (B, Cin, H, W); weight: (Cout, Cin, 3, 3) OIHW; bias: (Cout,).
    compute_dtype: optional narrower matmul dtype (e.g. jnp.bfloat16); f32 accum.
    """
    B, Cin, H, W = x_nchw.shape
    Cout = weight.shape[0]
    Ho, Wo = (H + 1) // 2, (W + 1) // 2
    W1 = Wo + 1
    C4 = 4 * Cin
    dtype = x_nchw.dtype
    cdt = jnp.dtype(compute_dtype) if compute_dtype is not None else jnp.dtype(dtype)
    isz = cdt.itemsize

    gen = _tpu_generation()
    tile_target = _TILE_TARGET_V7 if gen == 7 else _TILE_TARGET
    vmem_cap = _VMEM_CAP_V7 if gen == 7 else _VMEM_CAP

    # Pad + space-to-depth in one fused wrapper copy.  Plane rows = Ho+1 (last
    # one is the halo for the final output row); channel order = (rp, cp, cin).
    xp = jnp.pad(x_nchw, ((0, 0), (0, 0),
                          (1, 2 * (Ho + 1) - H - 1),
                          (1, 2 * W1 - W - 1)))
    x_s2d = (xp.reshape(B, Cin, Ho + 1, 2, W1, 2)
               .transpose(0, 2, 4, 3, 5, 1)
               .reshape(B, Ho + 1, W1, C4)).astype(cdt)

    # Zero-free weight packing: total K = 9*Cin.
    wt = jnp.transpose(weight, (2, 3, 1, 0)).astype(cdt)        # (3, 3, Cin, Cout)
    w_a = jnp.concatenate([wt[0, 0], wt[0, 1], wt[1, 0], wt[1, 1]], axis=0)
    w_c = jnp.concatenate([wt[2, 0], wt[2, 1]], axis=0)
    w_s = jnp.stack([wt[0, 2], wt[1, 2], wt[2, 2]], axis=0)      # (3, Cin, Cout)
    b2d = bias.reshape(1, Cout).astype(jnp.float32)

    # Output-row tiling from the per-generation VMEM budget.
    row_bytes = W1 * C4 * isz

    def est_bytes(th):
        in_blk = th * row_bytes
        out_blk = th * Wo * Cout * isz
        w_bytes = 9 * Cin * Cout * isz + 4 * Cout
        temps = in_blk + 6 * th * W1 * Cout * 4
        return 2 * (in_blk + row_bytes + out_blk) + 2 * w_bytes + temps

    th_cap = max(1, tile_target // row_bytes)
    if gen == 7 and B < 2 and Ho >= 2:      # feed both v7x TensorCores at batch 1
        th_cap = min(th_cap, max(1, Ho // 2))
    TH = _largest_divisor_leq(Ho, th_cap)
    while TH > 1 and est_bytes(TH) > vmem_cap:
        TH = _largest_divisor_leq(Ho, TH - 1)
    n_h = Ho // TH
    vmem = int(min(vmem_cap, max(_VMEM_FLOOR, 1.3 * est_bytes(TH))))

    out_nhwc = pl.pallas_call(
        _conv_down_kernel,
        out_shape=jax.ShapeDtypeStruct((B, Ho, Wo, Cout), dtype),
        grid=(B, n_h),
        in_specs=[
            pl.BlockSpec((1, TH, W1, C4), lambda b, h: (b, h, 0, 0)),
            pl.BlockSpec((1, 1, W1, C4), lambda b, h: (b, h * TH + TH, 0, 0)),
            pl.BlockSpec((C4, Cout), lambda b, h: (0, 0)),
            pl.BlockSpec((2 * Cin, Cout), lambda b, h: (0, 0)),
            pl.BlockSpec((3, Cin, Cout), lambda b, h: (0, 0, 0)),
            pl.BlockSpec((1, Cout), lambda b, h: (0, 0)),
        ],
        out_specs=pl.BlockSpec((1, TH, Wo, Cout), lambda b, h: (b, h, 0, 0)),
        compiler_params=pltpu.CompilerParams(
            dimension_semantics=("parallel", "parallel"),
            vmem_limit_bytes=vmem,
        ),
    )(x_s2d, x_s2d, w_a, w_c, w_s, b2d)

    if out_layout == "NHWC":
        return out_nhwc
    return jnp.transpose(out_nhwc, (0, 3, 1, 2))


# ----------------------------------------------------------------------------
# AvgPool path: AvgPool2d(kernel=2, stride=2), floor semantics
# ----------------------------------------------------------------------------
def _avgpool_down_kernel(x_ref, pool_ref, o_ref):
    """x_ref: (TM, 4*Wo) rows [row 2i | row 2i+1]; pool_ref: (4*Wo, Wo) with 0.25s."""
    o_ref[...] = jnp.dot(x_ref[...], pool_ref[...],
                         preferred_element_type=jnp.float32).astype(o_ref.dtype)


def downsample_avgpool(x_nchw):
    """AvgPool2d(kernel=2, stride=2) on an NCHW input; returns NCHW."""
    B, C, H, W = x_nchw.shape
    Ho, Wo = H // 2, W // 2
    M = B * C * Ho
    dtype = x_nchw.dtype
    isz = jnp.dtype(dtype).itemsize

    # Free reshape (crop is a no-op for even H, W): each row holds one output
    # row's two input rows back-to-back -> 4*Wo lanes.
    x_rows = x_nchw[:, :, :2 * Ho, :2 * Wo].reshape(M, 4 * Wo)

    # (4*Wo, Wo) matrix that does both pair sums and the /4 in one MXU pass.
    col = (jnp.arange(4 * Wo) % (2 * Wo)) // 2
    pool = jnp.where(col[:, None] == jnp.arange(Wo)[None, :], 0.25, 0.0).astype(dtype)

    gen = _tpu_generation()
    tile_target = _TILE_TARGET_V7 if gen == 7 else _TILE_TARGET
    vmem_cap = _VMEM_CAP_V7 if gen == 7 else _VMEM_CAP

    sub = {1: 32, 2: 16}.get(isz, 8)
    row_bytes = 4 * Wo * isz
    tm = max(sub, (tile_target // row_bytes) // sub * sub)
    if gen == 7 and M >= 2 * sub:           # >= 2 grid points on the 2-core chip
        tm = min(tm, max(sub, (M // 2) // sub * sub))
    if tm >= M:
        tm = M

    est = 2 * (tm * row_bytes + tm * Wo * isz) + 4 * Wo * Wo * isz \
        + 2 * tm * Wo * 4
    vmem = int(min(vmem_cap, max(_VMEM_FLOOR, 1.3 * est)))

    out = pl.pallas_call(
        _avgpool_down_kernel,
        out_shape=jax.ShapeDtypeStruct((M, Wo), dtype),
        grid=(pl.cdiv(M, tm),),
        in_specs=[
            pl.BlockSpec((tm, 4 * Wo), lambda m: (m, 0)),
            pl.BlockSpec((4 * Wo, Wo), lambda m: (0, 0)),
        ],
        out_specs=pl.BlockSpec((tm, Wo), lambda m: (m, 0)),
        compiler_params=pltpu.CompilerParams(
            dimension_semantics=("parallel",),
            vmem_limit_bytes=vmem,
        ),
    )(x_rows, pool)

    return out.reshape(B, C, Ho, Wo)


# ----------------------------------------------------------------------------
# Pure-JAX references for validation
# ----------------------------------------------------------------------------
def _conv_ref(x_nchw, weight, bias):
    out = lax.conv_general_dilated(
        x_nchw, weight, window_strides=(2, 2), padding=((1, 1), (1, 1)),
        dimension_numbers=("NCHW", "OIHW", "NCHW"),
        precision=lax.Precision.HIGHEST)
    return out + bias.reshape(1, -1, 1, 1)


def _avgpool_ref(x_nchw):
    B, C, H, W = x_nchw.shape
    Ho, Wo = H // 2, W // 2
    x = x_nchw[:, :, :2 * Ho, :2 * Wo]
    return x.reshape(B, C, Ho, 2, Wo, 2).mean(axis=(3, 5))


if __name__ == "__main__":
    key = jax.random.PRNGKey(0)
    ks = jax.random.split(key, 8)

    # use_conv=True path ------------------------------------------------------
    B, Cin, H, W = 2, 4, 16, 16
    Cout = 8
    x = jax.random.normal(ks[0], (B, Cin, H, W), dtype=jnp.float32)
    weight = jax.random.normal(ks[1], (Cout, Cin, 3, 3), dtype=jnp.float32) * 0.1
    bias = jax.random.normal(ks[2], (Cout,), dtype=jnp.float32) * 0.01

    y = jax.block_until_ready(downsample_conv(x, weight, bias))
    y_ref = _conv_ref(x, weight, bias)
    assert y.shape == (B, Cout, H // 2, W // 2)
    err = float(jnp.max(jnp.abs(y - y_ref)))
    assert err < 5e-3, err

    # odd spatial size / batch-1 variant (halo + aligned-W1 path)
    x2 = jax.random.normal(ks[3], (1, 3, 15, 13), dtype=jnp.float32)
    w2 = jax.random.normal(ks[4], (6, 3, 3, 3), dtype=jnp.float32) * 0.1
    b2 = jax.random.normal(ks[5], (6,), dtype=jnp.float32) * 0.01
    y2 = jax.block_until_ready(downsample_conv(x2, w2, b2))
    y2_ref = _conv_ref(x2, w2, b2)
    assert y2.shape == (1, 6, 8, 7)
    err2 = float(jnp.max(jnp.abs(y2 - y2_ref)))
    assert err2 < 5e-3, err2

    # bf16 compute-dtype smoke test (f32 accumulation, loose tolerance)
    y3 = jax.block_until_ready(
        downsample_conv(x, weight, bias, compute_dtype=jnp.bfloat16))
    err3 = float(jnp.max(jnp.abs(y3 - y_ref)))
    assert err3 < 5e-2, err3

    # use_conv=False path -----------------------------------------------------
    p = jax.block_until_ready(downsample_avgpool(x))
    p_ref = _avgpool_ref(x)
    assert p.shape == (B, Cin, H // 2, W // 2)
    assert float(jnp.max(jnp.abs(p - p_ref))) < 2e-2

    x3 = jax.random.normal(ks[6], (1, 3, 7, 9), dtype=jnp.float32)
    p3 = jax.block_until_ready(downsample_avgpool(x3))
    p3_ref = _avgpool_ref(x3)
    assert p3.shape == (1, 3, 3, 4)
    assert float(jnp.max(jnp.abs(p3 - p3_ref))) < 2e-2

    print("KERNEL_OK")
</pallas_src>

<mosaic_0001>
module attributes {stable_mosaic.version = 11 : i64} {
  func.func @_conv_down_kernel(%arg0: i32, %arg1: i32, %arg2: memref<1x8x9x16xf32, #tpu.memory_space<vmem>>, %arg3: memref<1x1x9x16xf32, #tpu.memory_space<vmem>>, %arg4: memref<16x8xf32, #tpu.memory_space<vmem>>, %arg5: memref<8x8xf32, #tpu.memory_space<vmem>>, %arg6: memref<3x4x8xf32, #tpu.memory_space<vmem>>, %arg7: memref<1x8xf32, #tpu.memory_space<vmem>>, %arg8: memref<1x8x8x8xf32, #tpu.memory_space<vmem>>) attributes {dimension_semantics = [#tpu.dimension_semantics<parallel>, #tpu.dimension_semantics<parallel>], iteration_bounds = array<i64: 2, 1>, scalar_prefetch = 0 : i64, scratch_operands = 0 : i64, tpu.core_type = #tpu.core_type<tc>, window_params = [{transform_indices = @transform_0, window_bounds = array<i64: 1, 8, 9, 16>}, {transform_indices = @transform_1, window_bounds = array<i64: 1, 1, 9, 16>}, {pipeline_mode = #tpu.pipeline_mode<synchronous>, transform_indices = @transform_2, window_bounds = array<i64: 16, 8>}, {pipeline_mode = #tpu.pipeline_mode<synchronous>, transform_indices = @transform_3, window_bounds = array<i64: 8, 8>}, {pipeline_mode = #tpu.pipeline_mode<synchronous>, transform_indices = @transform_4, window_bounds = array<i64: 3, 4, 8>}, {pipeline_mode = #tpu.pipeline_mode<synchronous>, transform_indices = @transform_5, window_bounds = array<i64: 1, 8>}, {transform_indices = @transform_6, window_bounds = array<i64: 1, 8, 8, 8>}]} {
    %c0 = arith.constant 0 : index
    %c0_0 = arith.constant 0 : index
    %c0_1 = arith.constant 0 : index
    %c0_2 = arith.constant 0 : index
    %0 = vector.load %arg2[%c0, %c0_0, %c0_1, %c0_2] : memref<1x8x9x16xf32, #tpu.memory_space<vmem>>, vector<1x8x9x16xf32>
    %1 = vector.shape_cast %0 : vector<1x8x9x16xf32> to vector<8x9x16xf32>
    %2 = vector.shape_cast %1 : vector<8x9x16xf32> to vector<72x16xf32>
    %c0_3 = arith.constant 0 : index
    %c0_4 = arith.constant 0 : index
    %c0_5 = arith.constant 0 : index
    %c0_6 = arith.constant 0 : index
    %3 = vector.load %arg3[%c0_3, %c0_4, %c0_5, %c0_6] : memref<1x1x9x16xf32, #tpu.memory_space<vmem>>, vector<1x1x9x16xf32>
    %4 = vector.shape_cast %3 : vector<1x1x9x16xf32> to vector<9x16xf32>
    %c0_7 = arith.constant 0 : index
    %c0_8 = arith.constant 0 : index
    %5 = vector.load %arg4[%c0_7, %c0_8] : memref<16x8xf32, #tpu.memory_space<vmem>>, vector<16x8xf32>
    %cst = arith.constant dense<0.000000e+00> : vector<72x8xf32>
    %6 = tpu.matmul %2, %5, %cst {dimension_numbers = #tpu.dot_dimension_numbers<[1], [0], [0], [1], [0, 0, 1, 1], [], []>} : vector<72x16xf32>, vector<16x8xf32>, vector<72x8xf32> -> vector<72x8xf32>
    %7 = vector.extract_strided_slice %2 {offsets = [0, 0], sizes = [72, 4], strides = [1, 1]} : vector<72x16xf32> to vector<72x4xf32>
    %c0_9 = arith.constant 0 : index
    %c0_10 = arith.constant 0 : index
    %c0_11 = arith.constant 0 : index
    %8 = vector.load %arg6[%c0_9, %c0_10, %c0_11] : memref<3x4x8xf32, #tpu.memory_space<vmem>>, vector<1x4x8xf32>
    %9 = vector.shape_cast %8 : vector<1x4x8xf32> to vector<4x8xf32>
    %cst_12 = arith.constant dense<0.000000e+00> : vector<72x8xf32>
    %10 = tpu.matmul %7, %9, %cst_12 {dimension_numbers = #tpu.dot_dimension_numbers<[1], [0], [0], [1], [0, 0, 1, 1], [], []>} : vector<72x4xf32>, vector<4x8xf32>, vector<72x8xf32> -> vector<72x8xf32>
    %11 = vector.extract_strided_slice %2 {offsets = [0, 8], sizes = [72, 4], strides = [1, 1]} : vector<72x16xf32> to vector<72x4xf32>
    %c1 = arith.constant 1 : index
    %c0_13 = arith.constant 0 : index
    %c0_14 = arith.constant 0 : index
    %12 = vector.load %arg6[%c1, %c0_13, %c0_14] : memref<3x4x8xf32, #tpu.memory_space<vmem>>, vector<1x4x8xf32>
    %13 = vector.shape_cast %12 : vector<1x4x8xf32> to vector<4x8xf32>
    %cst_15 = arith.constant dense<0.000000e+00> : vector<72x8xf32>
    %14 = tpu.matmul %11, %13, %cst_15 {dimension_numbers = #tpu.dot_dimension_numbers<[1], [0], [0], [1], [0, 0, 1, 1], [], []>} : vector<72x4xf32>, vector<4x8xf32>, vector<72x8xf32> -> vector<72x8xf32>
    %15 = arith.addf %10, %14 : vector<72x8xf32>
    %16 = vector.extract_strided_slice %4 {offsets = [0, 0], sizes = [9, 8], strides = [1, 1]} : vector<9x16xf32> to vector<9x8xf32>
    %c0_16 = arith.constant 0 : index
    %c0_17 = arith.constant 0 : index
    %17 = vector.load %arg5[%c0_16, %c0_17] : memref<8x8xf32, #tpu.memory_space<vmem>>, vector<8x8xf32>
    %cst_18 = arith.constant dense<0.000000e+00> : vector<9x8xf32>
    %18 = tpu.matmul %16, %17, %cst_18 {dimension_numbers = #tpu.dot_dimension_numbers<[1], [0], [0], [1], [0, 0, 1, 1], [], []>} : vector<9x8xf32>, vector<8x8xf32>, vector<9x8xf32> -> vector<9x8xf32>
    %19 = vector.extract_strided_slice %4 {offsets = [0, 0], sizes = [9, 4], strides = [1, 1]} : vector<9x16xf32> to vector<9x4xf32>
    %c2 = arith.constant 2 : index
    %c0_19 = arith.constant 0 : index
    %c0_20 = arith.constant 0 : index
    %20 = vector.load %arg6[%c2, %c0_19, %c0_20] : memref<3x4x8xf32, #tpu.memory_space<vmem>>, vector<1x4x8xf32>
    %21 = vector.shape_cast %20 : vector<1x4x8xf32> to vector<4x8xf32>
    %cst_21 = arith.constant dense<0.000000e+00> : vector<9x8xf32>
    %22 = tpu.matmul %19, %21, %cst_21 {dimension_numbers = #tpu.dot_dimension_numbers<[1], [0], [0], [1], [0, 0, 1, 1], [], []>} : vector<9x4xf32>, vector<4x8xf32>, vector<9x8xf32> -> vector<9x8xf32>
    %23 = vector.extract_strided_slice %2 {offsets = [0, 0], sizes = [72, 8], strides = [1, 1]} : vector<72x16xf32> to vector<72x8xf32>
    %c0_22 = arith.constant 0 : index
    %c0_23 = arith.constant 0 : index
    %24 = vector.load %arg5[%c0_22, %c0_23] : memref<8x8xf32, #tpu.memory_space<vmem>>, vector<8x8xf32>
    %cst_24 = arith.constant dense<0.000000e+00> : vector<72x8xf32>
    %25 = tpu.matmul %23, %24, %cst_24 {dimension_numbers = #tpu.dot_dimension_numbers<[1], [0], [0], [1], [0, 0, 1, 1], [], []>} : vector<72x8xf32>, vector<8x8xf32>, vector<72x8xf32> -> vector<72x8xf32>
    %26 = vector.extract_strided_slice %2 {offsets = [0, 0], sizes = [72, 4], strides = [1, 1]} : vector<72x16xf32> to vector<72x4xf32>
    %c2_25 = arith.constant 2 : index
    %c0_26 = arith.constant 0 : index
    %c0_27 = arith.constant 0 : index
    %27 = vector.load %arg6[%c2_25, %c0_26, %c0_27] : memref<3x4x8xf32, #tpu.memory_space<vmem>>, vector<1x4x8xf32>
    %28 = vector.shape_cast %27 : vector<1x4x8xf32> to vector<4x8xf32>
    %cst_28 = arith.constant dense<0.000000e+00> : vector<72x8xf32>
    %29 = tpu.matmul %26, %28, %cst_28 {dimension_numbers = #tpu.dot_dimension_numbers<[1], [0], [0], [1], [0, 0, 1, 1], [], []>} : vector<72x4xf32>, vector<4x8xf32>, vector<72x8xf32> -> vector<72x8xf32>
    %30 = vector.extract_strided_slice %25 {offsets = [9, 0], sizes = [63, 8], strides = [1, 1]} : vector<72x8xf32> to vector<63x8xf32>
    %31 = tpu.concatenate %30, %18 in 0 : vector<63x8xf32>, vector<9x8xf32> -> vector<72x8xf32>
    %32 = vector.extract_strided_slice %29 {offsets = [9, 0], sizes = [63, 8], strides = [1, 1]} : vector<72x8xf32> to vector<63x8xf32>
    %33 = tpu.concatenate %32, %22 in 0 : vector<63x8xf32>, vector<9x8xf32> -> vector<72x8xf32>
    %34 = arith.addf %6, %31 : vector<72x8xf32>
    %35 = vector.shape_cast %34 : vector<72x8xf32> to vector<8x9x8xf32>
    %36 = arith.addf %15, %33 : vector<72x8xf32>
    %37 = vector.shape_cast %36 : vector<72x8xf32> to vector<8x9x8xf32>
    %38 = vector.extract_strided_slice %35 {offsets = [0, 0, 0], sizes = [8, 8, 8], strides = [1, 1, 1]} : vector<8x9x8xf32> to vector<8x8x8xf32>
    %39 = vector.extract_strided_slice %37 {offsets = [0, 1, 0], sizes = [8, 8, 8], strides = [1, 1, 1]} : vector<8x9x8xf32> to vector<8x8x8xf32>
    %40 = arith.addf %38, %39 : vector<8x8x8xf32>
    %c0_29 = arith.constant 0 : index
    %c0_30 = arith.constant 0 : index
    %41 = vector.load %arg7[%c0_29, %c0_30] : memref<1x8xf32, #tpu.memory_space<vmem>>, vector<1x8xf32>
    %42 = vector.shape_cast %41 : vector<1x8xf32> to vector<1x1x8xf32>
    %43 = vector.broadcast %42 : vector<1x1x8xf32> to vector<8x8x8xf32>
    %44 = arith.addf %40, %43 : vector<8x8x8xf32>
    %c0_31 = arith.constant 0 : index
    %c0_32 = arith.constant 0 : index
    %c0_33 = arith.constant 0 : index
    %c0_34 = arith.constant 0 : index
    %45 = vector.load %arg8[%c0_31, %c0_32, %c0_33, %c0_34] : memref<1x8x8x8xf32, #tpu.memory_space<vmem>>, vector<1x8x8x8xf32>
    %46 = vector.shape_cast %45 : vector<1x8x8x8xf32> to vector<8x8x8xf32>
    %47 = vector.shape_cast %44 : vector<8x8x8xf32> to vector<1x8x8x8xf32>
    tpu.vector_store %arg8[%c0_31, %c0_32, %c0_33, %c0_34], %47 {strides = array<i32>} : memref<1x8x8x8xf32, #tpu.memory_space<vmem>>, vector<1x8x8x8xf32>,
    return
  }
  func.func @transform_0(%arg0: i32, %arg1: i32) -> (i32, i32, i32, i32) {
    %c0_i32 = arith.constant 0 : i32
    %c0_i32_0 = arith.constant 0 : i32
    %c0_i32_1 = arith.constant 0 : i32
    return %arg0, %arg1, %c0_i32, %c0_i32_0 : i32, i32, i32, i32
  }
  func.func @transform_1(%arg0: i32, %arg1: i32) -> (i32, i32, i32, i32) {
    %c8_i32 = arith.constant 8 : i32
    %0 = arith.muli %arg1, %c8_i32 : i32
    %c8_i32_0 = arith.constant 8 : i32
    %1 = arith.addi %0, %c8_i32_0 : i32
    %c0_i32 = arith.constant 0 : i32
    %c0_i32_1 = arith.constant 0 : i32
    %c0_i32_2 = arith.constant 0 : i32
    return %arg0, %1, %c0_i32, %c0_i32_1 : i32, i32, i32, i32
  }
  func.func @transform_2(%arg0: i32, %arg1: i32) -> (i32, i32) {
    %c0_i32 = arith.constant 0 : i32
    %c0_i32_0 = arith.constant 0 : i32
    %c0_i32_1 = arith.constant 0 : i32
    return %c0_i32, %c0_i32_0 : i32, i32
  }
  func.func @transform_3(%arg0: i32, %arg1: i32) -> (i32, i32) {
    %c0_i32 = arith.constant 0 : i32
    %c0_i32_0 = arith.constant 0 : i32
    %c0_i32_1 = arith.constant 0 : i32
    return %c0_i32, %c0_i32_0 : i32, i32
  }
  func.func @transform_4(%arg0: i32, %arg1: i32) -> (i32, i32, i32) {
    %c0_i32 = arith.constant 0 : i32
    %c0_i32_0 = arith.constant 0 : i32
    %c0_i32_1 = arith.constant 0 : i32
    %c0_i32_2 = arith.constant 0 : i32
    return %c0_i32, %c0_i32_0, %c0_i32_1 : i32, i32, i32
  }
  func.func @transform_5(%arg0: i32, %arg1: i32) -> (i32, i32) {
    %c0_i32 = arith.constant 0 : i32
    %c0_i32_0 = arith.constant 0 : i32
    %c0_i32_1 = arith.constant 0 : i32
    return %c0_i32, %c0_i32_0 : i32, i32
  }
  func.func @transform_6(%arg0: i32, %arg1: i32) -> (i32, i32, i32, i32) {
    %c0_i32 = arith.constant 0 : i32
    %c0_i32_0 = arith.constant 0 : i32
    %c0_i32_1 = arith.constant 0 : i32
    return %arg0, %arg1, %c0_i32, %c0_i32_0 : i32, i32, i32, i32
  }
}

</mosaic_0001>

<bundles_post_ra>
// kernel: tpu_custom_call.1
= control target key start
LH: loop header
LB: loop body
LE: loop exit
PB: predicated region body
PF: predicated region fallthrough
CT: control target
= control target key end

     0   :  { %11 = vsyncpa [#allocation3], 0  ;;  %s5535_s0 = inlined_call_operand.vmem [shape: f32[2,9,9,16], index: 0, kind: input, shape index: {}]   ;;  %s5536_s1 = inlined_call_operand.vmem [shape: f32[2,9,9,16], index: 1, kind: input, shape index: {}]   ;;  %s5537_s2 = inlined_call_operand.vmem [shape: f32[16,8], index: 2, kind: input, shape index: {}]   ;;  %s5538_s3 = inlined_call_operand.vmem [shape: f32[8,8], index: 3, kind: input, shape index: {}]   ;;  %s5539_s4 = inlined_call_operand.vmem [shape: f32[3,4,8], index: 4, kind: input, shape index: {}]   ;;  %s5540_s5 = inlined_call_operand.vmem [shape: f32[1,8], index: 5, kind: input, shape index: {}]   ;;  %s5541_s6 = inlined_call_operand.hbm [shape: f32[2,8,8,8], index: 6, kind: output, shape index: {}]  }
   0x1   :  { %13 = vsyncpa [#allocation3 + $0x1], 0  ;;  %s4548_s21 = smov 0   ;;  %s4550_s22 = smov 0  }
   0x2   :  { %s4552_s23 = smov 0   ;;  %s4554_s24 = smov 0  }
   0x3   :  { %s4556_s25 = smov 0   ;;  %s4558_s26 = smov 0  }
   0x4 LB: > { %s4045_s27 = sadd.s32 4294967295, %s4503_s26   ;;  %s4046_s28 = sadd.s32 4294967294, %s4503_s26   ;;  %s4503_s26 = sphi %s4558_s26, %s19_s26   ;;  %s4499_s25 = sphi %s4556_s25, %s5563_s25   ;;  %s4495_s24 = sphi %s4554_s24, %s5562_s24   ;;  %s4491_s23 = sphi %s4552_s23, %s5561_s23   ;;  %s4487_s22 = sphi %s4550_s22, %s5560_s22   ;;  %s4483_s21 = sphi %s4548_s21, %s5559_s21  }
   0x5   : > { %s31_s29 = sadd.s32 1, %s4499_s25  ;;  %s184_s30 = sadd.s32 1, %s4491_s23 }
   0x6   : > { %p33_p0 = scmp.ge.s32.totalorder %s31_s29, 2  ;;  %p194_p1 = scmp.ne.s32.totalorder %s4491_s23, %s4487_s22 }
   0x7   : > { %p195_p2 = scmp.eq.s32.totalorder %s4045_s27, 1  ;;  %p200_p3 = scmp.ne.s32.totalorder %s4487_s22, %s4483_s21 }
   0x8   : > { %s5565_s29 = smov (%p33_p0, %s31_s29), 0  ;;  %p201_p5 = scmp.eq.s32.totalorder %s4046_s28, 1 }
   0x9   : > { %p4588_p4 = por %p195_p2, %p194_p1  ;;  %s179_s8 = ssub.s32 %s4499_s25, %s5565_s29 }
   0xa   : > { %p4049_p6 = scmp.ge.s32.totalorder %s4503_s26, 1  ;;  %p182_p7 = scmp.eq.s32.totalorder %s179_s8, 0 }
   0xb   : > { %p4595_p8 = por %p201_p5, %p200_p3  ;;  %p271_p9 = scmp.lt.s32.totalorder %s4503_s26, 3 }
   0xc   : > { %s4601_s10 = scalar_select %p182_p7, %s4491_s23, %s184_s30  }
   0xd   : > { %p272_p10 = pnand %p4049_p6, %p271_p9 }
   0xf   : > { %275 = sbr.rel (%p272_p10) target bundleno = 612 (0x264), region = 44 }
  0x16   : > { %p328_p11 = scmp.lt.s32.totalorder %s4495_s24, 1  ;;  %v393_v0 = vlaneseq  ;;  %vm1378_vm0 = vcmask 1043456   ;;  %v4505_v1 = vmov 1966171168   ;;  %v4506_v3 = vmov 0.0   ;;  %v4663_v38 = vld [vmem:[%s5538_s3] sm:$0xff] }
  0x17   : > { %v391_v2 = vunpack.c.l.s4 %v4505_v1  ;;  %4350 = vmatprep.subr.mxu1 %v4506_v3  ;;  %v4061_v4 = vld [vmem:[%s5539_s4 + $0x4] sm:$0xf]  ;;  %4190 = vmatprep.subr.mxu0 %v4506_v3  ;;  %vm4507_vm1 = vmmov 0   ;;  %s4508_s20 = smov 120   ;;  %vm1359_vm2 = vcmask 31744   ;;  %vm1624_vm3 = vcmask 64512  }
  0x18   : > { %s4610_s13 = scalar_select %p328_p11, %s4495_s24, 1  ;;  %v394_v5 = vshrl.u32 %v393_v0, 7  ;;  %4351 = vmatpush3.msk.msra.mxu1 %vm1378_vm0, %v4061_v4  ;;  %4207 = vmatprep.mubr.msk.f32.mxu1 %vm4507_vm1, %v4506_v3  ;;  %vm2105_vm4 = vcmask 130048   ;;  %vm2034_vm5 = vcmask 1046528  }
  0x19   : > { %v392_v6 = vunpack.c.0.s8 %v391_v2  ;;  %4191 = vmatpush3.msk.msra.mxu0 %vm1378_vm0, %v4061_v4  ;;  %4219 = vmatprep.subr.mxu1 %v4506_v3  ;;  %s319_s27 = sand.u32 1, %s4487_s22   ;;  %s4132_s8 = sshll.u32 %s4495_s24, 10 }
  0x1a   : > { %s4352_s14 = smul.u32 144, %s4610_s13  ;;  %4192 = vmatprep.mubr.msk.f32.mxu0 %vm4507_vm1, %v4506_v3  ;;  %4248 = vmatprep.subr.mxu0 %v4663_v38  ;;  %s4050_s28 = sshll.u32 %s319_s27, 6 }
  0x1b   : > { %v4620_v7 = vsub.s32 %v392_v6, %v394_v5  ;;  %s5217_s30 = scalar_lea.vmem [#allocation2], %s4050_s28  ;;  %s5489_s24 = scalar_lea.sflag [#allocation3], %s319_s27 }
  0x1c   : > { %s4627_s17 = scalar_lea.vmem %s5535_s0, %s4352_s14  ;;  %s4131_s11 = sadd.s32 128, %s4352_s14 }
  0x1d   : > { %v4630_v8 = vld [vmem:[%s4627_s17 + $0x40] sm:$0xff]  ;;  %v4057_v9 = vld.sshfl [vmem:[%s4627_s17 + $0x48] sm:$0x1 pattern:$0x75316420]  ;;  %v367_v10 = vld [vmem:[%s4627_s17 + $0x50] sm:$0xff]  ;;  %s353_s16 = scalar_lea.vmem %s5536_s1, %s4131_s11 }
  0x1e   : > { %v641_v11 = vcombine.high %v4630_v8, %v4630_v8  ;;  %v703_v12 = vrot.slane %v4057_v9, %v4620_v7  ;;  %v711_v13 = vrot.slane %v367_v10, %v4620_v7  ;;  %v4058_v14 = vld.sshfl [vmem:[%s4627_s17 + $0x58] sm:$0x1 pattern:$0x75316420]  ;;  %v4640_v15 = vld [vmem:[%s4627_s17 + $0x60] sm:$0xff]  ;;  %v704_v16 = vcombine.high %v367_v10, %v367_v10  ;;  %v359_v0 = vld [vmem:[%s4627_s17 + $0x10] sm:$0xff] }
  0x1f   : > { %v357_v17 = vld [vmem:[%s4627_s17] sm:$0xff]  ;;  %v766_v18 = vrot.slane %v4058_v14, %v4620_v7  ;;  %v774_v19 = vrot.slane %v4640_v15, %v4620_v7  ;;  %v4053_v55 = vld.sshfl [vmem:[%s4627_s17 + $0x8] sm:$0x1 pattern:$0x75316420]  ;;  %s3942_s11 = sshll.u32 %s5217_s30, 4  ;;  %s5483_s11 = int_to_ptr.vmem [resolvable:$true] %s3942_s11 }
  0x20   : > { %v389_v20 = vcombine.high %v357_v17, %v357_v17  ;;  %v396_v21 = vrot.slane %v357_v17, %v4620_v7  ;;  %v655_v22 = vrot.slane %v641_v11, %v4620_v7  ;;  %v719_v23 = vcombine.high %v711_v13, %v711_v13  ;;  %s4425_s13 = scalar_lea.vmem %s5483_s11, 1024  ;;  %s4510_s14 = smov [#allocation2]  }
  0x21   : > { %v727_v24 = vrot.slane %v711_v13, %v4620_v7  ;;  %v718_v25 = vrot.slane %v704_v16, %v4620_v7  ;;  %v782_v26 = vcombine.high %v774_v19, %v774_v19  ;;  %v4651_v27 = vrot.slane %v774_v19, %v4620_v7  ;;  %p4426_p12 = scmp.ne.s32.totalorder %s5483_s11, %s4425_s13 }
  0x22   : > { %v403_v28 = vrot.slane %v389_v20, %v4620_v7  ;;  %v404_v29 = vcombine.high %v396_v21, %v396_v21  ;;  %v657_v30 = vcombine.high %v655_v22, %v655_v22  ;;  %v671_v31 = vrot.slane %v655_v22, %v4620_v7 }
  0x23   : > { %v741_v32 = vrot.slane %v719_v23, %v4620_v7  ;;  %v749_v33 = vcombine.high %v727_v24, %v727_v24  ;;  %v1147_v34 = vcombine.low %v703_v12, %v727_v24  ;;  %v720_v35 = vcombine.high %v718_v25, %v718_v25  ;;  %p4427_p13 = pnand %p4426_p12, %p4588_p4 }
  0x24   : > { %v734_v36 = vrot.slane %v718_v25, %v4620_v7  ;;  %v4658_v37 = vrot.slane %v782_v26, %v4620_v7  ;;  %v685_v39 = vrot.slane %v657_v30, %v4620_v7  ;;  %v405_v42 = vcombine.high %v403_v28, %v403_v28 }
  0x25   : > { %v1148_v40 = vcombine.low %v741_v32, %v749_v33  ;;  %v751_v41 = vcombine.high %v741_v32, %v741_v32  ;;  %v1169_v43 = vrot.slane %v1147_v34, %v4620_v7  ;;  %v748_v44 = vrot.slane %v720_v35, %v4620_v7  ;;  %p4428_p0 = pneg %p4427_p13 }
  0x26   : > { %v750_v45 = vcombine.high %v734_v36, %v734_v36  ;;  %v1197_v46 = vcombine.low %v4651_v27, %v4658_v37  ;;  %v1145_v47 = vcombine.low %v671_v31, %v685_v39  ;;  %v4067_v48 = vcombine.high %v671_v31, %v685_v39 }
  0x27   : > { %v1176_v49 = vrot.slane %v1148_v40, %v4620_v7  ;;  %v1194_v50 = vcombine.low %v751_v41, %v734_v36  ;;  %v752_v51 = vcombine.high %v748_v44, %v748_v44  ;;  %v412_v54 = vrot.slane %v396_v21, %v4620_v7  ;;  %v4059_v21 = vld.sshfl [vmem:[%s4627_s17 + $0x68] sm:$0x1 pattern:$0x75316420] }
  0x28   : > { %v1195_v52 = vcombine.low %v748_v44, %v750_v45  ;;  %v1225_v53 = vrot.slane %v1197_v46, %v4620_v7  ;;  %v1155_v56 = vrot.slane %v1145_v47, %v4620_v7  ;;  %v1162_v57 = vrot.slane %v4067_v48, %v4620_v7  ;;  %v371_v44 = vld [vmem:[%s4627_s17 + $0x70] sm:$0xff] }
  0x29   : > { %v1178_v58 = vcombine.low %v1169_v43, %v1176_v49  ;;  %v1204_v59 = vrot.slane %v1194_v50, %v4620_v7  ;;  %v1196_v60 = vcombine.low %v752_v51, %v766_v18  ;;  %v419_v62 = vrot.slane %v403_v28, %v4620_v7 }
  0x2a   : > { %v1211_v61 = vrot.slane %v1195_v52, %v4620_v7  ;;  %v426_v63 = vrot.slane %v404_v29, %v4620_v7  ;;  %v1177_v1 = vcombine.low %v1155_v56, %v1162_v57  ;;  %v433_v4 = vrot.slane %v405_v42, %v4620_v7 }
  0x2b   : > { %v1192_v2 = vrot.slane %v1178_v58, %v4620_v7  ;;  %v451_v5 = vrot.slane %v4053_v55, %v4620_v7  ;;  %v1218_v6 = vrot.slane %v1196_v60, %v4620_v7  ;;  %v452_v16 = vcombine.high %v359_v0, %v359_v0  ;;  %v361_v58 = vld [vmem:[%s4627_s17 + $0x20] sm:$0xff] }
  0x2c   : > { %v1226_v9 = vcombine.low %v1204_v59, %v1211_v61  ;;  %v900_v10 = vcombine.low %v412_v54, %v426_v63  ;;  %v4062_v11 = vcombine.high %v412_v54, %v426_v63  ;;  %v1185_v12 = vrot.slane %v1177_v1, %v4620_v7 }
  0x2d   : > { %v902_v13 = vcombine.low %v419_v62, %v433_v4  ;;  %v4063_v14 = vcombine.high %v419_v62, %v433_v4  ;;  %v1227_v17 = vcombine.low %v1218_v6, %v1225_v53  ;;  %v459_v25 = vrot.slane %v359_v0, %v4620_v7  ;;  %v4054_v53 = vld.sshfl [vmem:[%s4627_s17 + $0x18] sm:$0x1 pattern:$0x75316420] }
  0x2e   : > { %v1234_v18 = vrot.slane %v1226_v9, %v4620_v7  ;;  %v910_v19 = vrot.slane %v900_v10, %v4620_v7  ;;  %v917_v20 = vrot.slane %v4062_v11, %v4620_v7  ;;  %v4691_v22 = vcombine.low %v1185_v12, %v1192_v2 }
  0x2f   : > { %v924_v23 = vrot.slane %v902_v13, %v4620_v7  ;;  %v931_v24 = vrot.slane %v4063_v14, %v4620_v7  ;;  %v1241_v26 = vrot.slane %v1227_v17, %v4620_v7  ;;  %v466_v29 = vrot.slane %v452_v16, %v4620_v7 }
  0x30   : > { %v932_v28 = vcombine.low %v910_v19, %v917_v20  ;;  %v767_v30 = vcombine.high %v4640_v15, %v4640_v15  ;;  %1351 = vrot.lane.b32.xlu0 %v4691_v22, %s4508_s20  ;;  %v467_v32 = vcombine.high %v459_v25, %v459_v25  ;;  %v475_v33 = vrot.slane %v459_v25, %v4620_v7 }
  0x31   : > { %v933_v31 = vcombine.low %v924_v23, %v931_v24  ;;  %v829_v34 = vrot.slane %v4059_v21, %v4620_v7  ;;  %v4704_v35 = vcombine.low %v1234_v18, %v1241_v26  ;;  %v468_v39 = vcombine.high %v466_v29, %v466_v29 }
  0x32   : > { %v940_v36 = vrot.slane %v932_v28, %v4620_v7  ;;  %v482_v40 = vrot.slane %v466_v29, %v4620_v7  ;;  %v489_v41 = vrot.slane %v467_v32, %v4620_v7  ;;  %v497_v42 = vcombine.high %v475_v33, %v475_v33 }
  0x33   : > { %v947_v15 = vrot.slane %v933_v31, %v4620_v7  ;;  %v949_v43 = vcombine.low %v451_v5, %v475_v33  ;;  %1353 = vrot.lane.b32.xlu1 %v4704_v35, %s4508_s20  ;;  %v496_v45 = vrot.slane %v468_v39, %v4620_v7  ;;  %v781_v47 = vrot.slane %v767_v30, %v4620_v7  ;;  %v4060_v30 = vld.sshfl [vmem:[%s4627_s17 + $0x78] sm:$0x1 pattern:$0x75316420] }
  0x34   : > { %v498_v46 = vcombine.high %v482_v40, %v482_v40  ;;  %v837_v48 = vrot.slane %v371_v44, %v4620_v7  ;;  %v499_v50 = vcombine.high %v489_v41, %v489_v41  ;;  %v950_v51 = vcombine.low %v489_v41, %v497_v42  ;;  %v4055_v39 = vld.sshfl [vmem:[%s4627_s17 + $0x28] sm:$0x1 pattern:$0x75316420] }
  0x35   : > { %v4716_v49 = vcombine.low %v940_v36, %v947_v15  ;;  %v959_v52 = vrot.slane %v949_v43, %v4620_v7  ;;  %v783_v55 = vcombine.high %v781_v47, %v781_v47  ;;  %v797_v56 = vrot.slane %v781_v47, %v4620_v7  ;;  %v363_v47 = vld [vmem:[%s4627_s17 + $0x30] sm:$0xff] }
  0x36   : > { %v952_v54 = vcombine.low %v496_v45, %v498_v46  ;;  %v853_v57 = vrot.slane %v837_v48, %v4620_v7  ;;  %v951_v59 = vcombine.low %v499_v50, %v482_v40  ;;  %v966_v60 = vrot.slane %v950_v51, %v4620_v7 }
  0x37   : > { %1341 = vrot.lane.b32.xlu0 %v4716_v49, %s4508_s20  ;;  %v4068_v61 = vcombine.high %v4651_v27, %v4658_v37  ;;  %v500_v62 = vcombine.high %v496_v45, %v496_v45  ;;  %v811_v0 = vrot.slane %v783_v55, %v4620_v7  ;;  %v514_v2 = vrot.slane %v4054_v53, %v4620_v7 }
  0x38   : > { %v980_v63 = vrot.slane %v952_v54, %v4620_v7  ;;  %v1246_v1 = vcombine.low %v829_v34, %v853_v57  ;;  %v973_v4 = vrot.slane %v951_v59, %v4620_v7  ;;  %v981_v5 = vcombine.low %v959_v52, %v966_v60 }
  0x39   : > { %v1253_v6 = vrot.slane %v4068_v61, %v4620_v7  ;;  %v515_v9 = vcombine.high %v361_v58, %v361_v58  ;;  %v1244_v10 = vcombine.low %v797_v56, %v811_v0  ;;  %v4069_v11 = vcombine.high %v797_v56, %v811_v0 }
  0x3a   : > { %v1274_v12 = vrot.slane %v1246_v1, %v4620_v7  ;;  %v522_v27 = vrot.slane %v361_v58, %v4620_v7  ;;  %v982_v37 = vcombine.low %v973_v4, %v980_v63  ;;  %v989_v13 = vrot.slane %v981_v5, %v4620_v7 }
  0x3b   : > { %v529_v14 = vrot.slane %v515_v9, %v4620_v7  ;;  %v998_v16 = vcombine.low %v500_v62, %v514_v2  ;;  %v1260_v17 = vrot.slane %v1244_v10, %v4620_v7  ;;  %v1267_v18 = vrot.slane %v4069_v11, %v4620_v7 }
  0x3c   : > { %v530_v19 = vcombine.high %v522_v27, %v522_v27  ;;  %v538_v20 = vrot.slane %v522_v27, %v4620_v7  ;;  %v996_v21 = vrot.slane %v982_v37, %v4620_v7  ;;  %v830_v31 = vcombine.high %v371_v44, %v371_v44 }
  0x3d   : > { %v531_v23 = vcombine.high %v529_v14, %v529_v14  ;;  %v545_v24 = vrot.slane %v529_v14, %v4620_v7  ;;  %v1008_v25 = vrot.slane %v998_v16, %v4620_v7  ;;  %v1275_v26 = vcombine.low %v1253_v6, %v1260_v17 }
  0x3e   : > { %v1276_v28 = vcombine.low %v1267_v18, %v1274_v12  ;;  %v552_v29 = vrot.slane %v530_v19, %v4620_v7  ;;  %v4745_v32 = vcombine.low %v989_v13, %v996_v21  ;;  %v845_v34 = vcombine.high %v837_v48, %v837_v48 }
  0x3f   : > { %v559_v33 = vrot.slane %v531_v23, %v4620_v7  ;;  %v875_v36 = vcombine.high %v853_v57, %v853_v57  ;;  %v1283_v40 = vrot.slane %v1275_v26, %v4620_v7  ;;  %v844_v45 = vrot.slane %v830_v31, %v4620_v7 }
  0x40   : > { %v1290_v15 = vrot.slane %v1276_v28, %v4620_v7  ;;  %v999_v41 = vcombine.low %v538_v20, %v552_v29  ;;  %v4064_v42 = vcombine.high %v538_v20, %v552_v29  ;;  %1343 = vrot.lane.b32.xlu1 %v4745_v32, %s4508_s20  ;;  %v867_v44 = vrot.slane %v845_v34, %v4620_v7 }
  0x41   : > { %v1001_v43 = vcombine.low %v545_v24, %v559_v33  ;;  %v892_v46 = vrot.slane %v4060_v30, %v4620_v7  ;;  %v577_v52 = vrot.slane %v4055_v39, %v4620_v7  ;;  %v846_v54 = vcombine.high %v844_v45, %v844_v45 }
  0x42   : > { %v4757_v48 = vcombine.low %v1283_v40, %v1290_v15  ;;  %v1015_v50 = vrot.slane %v999_v41, %v4620_v7  ;;  %v1022_v51 = vrot.slane %v4064_v42, %v4620_v7  ;;  %v860_v55 = vrot.slane %v844_v45, %v4620_v7 }
  0x43   : > { %v1029_v53 = vrot.slane %v1001_v43, %v4620_v7  ;;  %v877_v56 = vcombine.high %v867_v44, %v867_v44  ;;  %v1292_v58 = vcombine.low %v867_v44, %v875_v36  ;;  %v578_v59 = vcombine.high %v363_v47, %v363_v47 }
  0x44   : > { %1355 = vrot.lane.b32.xlu0 %v4757_v48, %s4508_s20  ;;  %v1030_v57 = vcombine.low %v1008_v25, %v1015_v50  ;;  %v585_v60 = vrot.slane %v363_v47, %v4620_v7  ;;  %v874_v62 = vrot.slane %v846_v54, %v4620_v7  ;;  %v876_v63 = vcombine.high %v860_v55, %v860_v55  ;;  %v4056_v25 = vld.sshfl [vmem:[%s4627_s17 + $0x38] sm:$0x1 pattern:$0x75316420]  ;;  %s4429_s17 = sshll.u32 %s4510_s14, 4  ;;  %s4430_s17 = int_to_ptr.vmem [resolvable:$false] %s4429_s17 }
  0x45   : > { %v1031_v61 = vcombine.low %v1022_v51, %v1029_v53  ;;  %v1293_v0 = vcombine.low %v877_v56, %v860_v55  ;;  %v1302_v2 = vrot.slane %v1292_v58, %v4620_v7  ;;  %v592_v4 = vrot.slane %v578_v59, %v4620_v7  ;;  %s4431_s18 = scalar_lea.vmem %s4430_s17, 2048  ;;  %p4432_p1 = scmp.lt.s32.totalorder %s5483_s11, %s4430_s17 }
  0x46   : > { %v1038_v1 = vrot.slane %v1030_v57, %v4620_v7  ;;  %v593_v5 = vcombine.high %v585_v60, %v585_v60  ;;  %v878_v9 = vcombine.high %v874_v62, %v874_v62  ;;  %v1294_v10 = vcombine.low %v874_v62, %v876_v63  ;;  %p4433_p2 = scmp.lt.s32.totalorder %s4431_s18, %s4425_s13 }
  0x47   : > { %v1045_v6 = vrot.slane %v1031_v61, %v4620_v7  ;;  %v1309_v11 = vrot.slane %v1293_v0, %v4620_v7  ;;  %v601_v12 = vrot.slane %v585_v60, %v4620_v7  ;;  %v608_v27 = vrot.slane %v592_v4, %v4620_v7 }
  0x48   : > { %v615_v37 = vrot.slane %v593_v5, %v4620_v7  ;;  %v4065_v13 = vcombine.high %v545_v24, %v559_v33  ;;  %v1295_v16 = vcombine.low %v878_v9, %v892_v46  ;;  %v1316_v17 = vrot.slane %v1294_v10, %v4620_v7  ;;  %p4434_p3 = por %p4433_p2, %p4432_p1 }
  0x49   : > { %v4776_v14 = vcombine.low %v1038_v1, %v1045_v6  ;;  %v1324_v18 = vcombine.low %v1302_v2, %v1309_v11  ;;  %v623_v19 = vcombine.high %v601_v12, %v601_v12  ;;  %v1048_v21 = vcombine.low %v577_v52, %v601_v12  ;;  %v4821_v6 = vld [vmem:[%s5539_s4 + $0x8] sm:$0xf] }
  0x4a   : > { %v625_v20 = vcombine.high %v615_v37, %v615_v37  ;;  %v1057_v23 = vrot.slane %v4065_v13, %v4620_v7  ;;  %v1323_v26 = vrot.slane %v1295_v16, %v4620_v7  ;;  %v594_v24 = vcombine.high %v592_v4, %v592_v4  ;;  %v897_v4 = vld [vmem:[%s5539_s4] sm:$0xf]  ;;  %p4435_p5 = pnand %p4434_p3, %p4428_p0 }
  0x4b   : > { %1345 = vrot.lane.b32.xlu1 %v4776_v14, %s4508_s20  ;;  %v1332_v28 = vrot.slane %v1324_v18, %v4620_v7  ;;  %v1049_v29 = vcombine.low %v615_v37, %v623_v19  ;;  %v1064_v31 = vrot.slane %v1048_v21, %v4620_v7  ;;  %v624_v33 = vcombine.high %v608_v27, %v608_v27  ;;  %v893_v16 = vld [vmem:[%s353_s16] sm:$0xff]  ;;  %v894_v18 = vld [vmem:[%s353_s16 + $0x8] sm:$0x1]  ;;  %s5481_s16 = scalar_lea.hbm %s5541_s6, %s4132_s8 }
  0x4c   : > { %v1050_v30 = vcombine.low %v625_v20, %v608_v27  ;;  %v1325_v34 = vcombine.low %v1316_v17, %v1323_v26  ;;  %v622_v36 = vrot.slane %v594_v24, %v4620_v7  ;;  %v640_v39 = vrot.slane %v4056_v25, %v4620_v7  ;;  %v895_v19 = vld [vmem:[%s5537_s2] sm:$0xff]  ;;  %v896_v20 = vld [vmem:[%s5537_s2 + $0x8] sm:$0xff] }
  0x4d   : > { %v648_v40 = vrot.slane %v4630_v8, %v4620_v7  ;;  %v1071_v15 = vrot.slane %v1049_v29, %v4620_v7  ;;  %v1079_v42 = vcombine.low %v1057_v23, %v1064_v31  ;;  %v4348_v21 = vpack.c.bf16 %v896_v20, %v895_v19 }
  0x4e   : > { %v1078_v41 = vrot.slane %v1050_v30, %v4620_v7  ;;  %v1339_v43 = vrot.slane %v1325_v34, %v4620_v7  ;;  %v626_v45 = vcombine.high %v622_v36, %v622_v36  ;;  %v1096_v51 = vcombine.low %v622_v36, %v624_v33 }
  0x4f   : > { %v656_v44 = vcombine.high %v648_v40, %v648_v40  ;;  %v664_v46 = vrot.slane %v648_v40, %v4620_v7  ;;  %v1087_v50 = vrot.slane %v1079_v42, %v4620_v7  ;;  %v4509_v23 = vmov 0.0|0.0  }
  0x50   : > { %v1080_v47 = vcombine.low %v1071_v15, %v1078_v41  ;;  %v4795_v52 = vcombine.low %v1332_v28, %v1339_v43  ;;  %v1097_v8 = vcombine.low %v626_v45, %v640_v39  ;;  %v1106_v55 = vrot.slane %v1096_v51, %v4620_v7 }
  0x51   : > { %v678_v53 = vrot.slane %v656_v44, %v4620_v7 }
  0x52   : > { %v1094_v54 = vrot.slane %v1080_v47, %v4620_v7  ;;  %1357 = vrot.lane.b32.xlu0 %v4795_v52, %s4508_s20  ;;  %v1113_v58 = vrot.slane %v1097_v8, %v4620_v7 }
  0x53   : > { %v1098_v56 = vcombine.low %v664_v46, %v678_v53  ;;  %v4066_v57 = vcombine.high %v664_v46, %v678_v53 }
  0x54   : > { %v4803_v59 = vcombine.low %v1087_v50, %v1094_v54  ;;  %v1128_v62 = vcombine.low %v1106_v55, %v1113_v58 }
  0x55   : > { %v1120_v60 = vrot.slane %v1098_v56, %v4620_v7  ;;  %v1127_v61 = vrot.slane %v4066_v57, %v4620_v7 }
  0x56   : > { %1347 = vrot.lane.b32.xlu1 %v4803_v59, %s4508_s20  ;;  %v1136_v0 = vrot.slane %v1128_v62, %v4620_v7 }
  0x57   : > { %v1129_v63 = vcombine.low %v1120_v60, %v1127_v61 }
  0x59   : > { %v1143_v1 = vrot.slane %v1129_v63, %v4620_v7 }
  0x5b   : > { %v4811_v2 = vcombine.low %v1136_v0, %v1143_v1 }
  0x5d   : > { %1349 = vrot.lane.b32.xlu0 %v4811_v2, %s4508_s20 }
  0xa2   : > { %v1352_v5 = vpop.permute.xlu0 %1351 }
  0xa3   : > { %4208 = vmatmul.mubr.msk.f32.vlgmr.msra.gmra.mrb[0].mxu1 %vm1359_vm2, %v1352_v5 }
  0xa4   : > { %4210 = vmatprep.mubr.msk.f32.mxu1 %vm4507_vm1, %v4506_v3  ;;  %4220 = vmatpush3.msk.msra.mxu1 %vm1378_vm0, %v897_v4 }
  0xa5   : > { %v1354_v9 = vpop.permute.xlu1 %1353  ;;  %4253 = vmatprep.subr.msk.mxu1 %vm1378_vm0, %v4821_v6 }
  0xa7   : > { %4211 = vmatmul.mubr.msk.f32.gmra.mrb[2].mxu1 %vm1359_vm2, %v1354_v9 }
  0xa8   : > { %4213 = vmatprep.mubr.msk.f32.mxu1 %vm4507_vm1, %v4506_v3 }
  0xa9   : > { %v1342_v10 = vpop.permute.xlu0 %1341 }
  0xaa   : > { %4193 = vmatmul.mubr.msk.f32.vlgmr.msra.gmra.mrb[0].mxu0 %vm1359_vm2, %v1342_v10 }
  0xab   : > { %4249 = vmatpush3.msra.mxu0 %v4663_v38  ;;  %4195 = vmatprep.mubr.msk.f32.mxu0 %vm4507_vm1, %v4506_v3 }
  0xac   : > { %4258 = vmatprep.subr.mxu0 %v4506_v3 }
  0xb2   : > { %v1344_v11 = vpop.permute.xlu1 %1343 }
  0xb3   : > { %4196 = vmatmul.mubr.msk.f32.gmra.mrb[2].mxu0 %vm1359_vm2, %v1344_v11 }
  0xb4   : > { %4198 = vmatprep.mubr.msk.f32.mxu0 %vm4507_vm1, %v4506_v3 }
  0xb6   : > { %v1356_v12 = vpop.permute.xlu0 %1355 }
  0xb7   : > { %4214 = vmatmul.mubr.msk.f32.gmra.mrb[4].mxu1 %vm1359_vm2, %v1356_v12 }
  0xb8   : > { %4216 = vmatprep.mubr.msk.f32.mxu1 %vm4507_vm1, %v4506_v3 }
  0xbd   : > { %v1346_v27 = vpop.permute.xlu1 %1345 }
  0xbe   : > { %4199 = vmatmul.mubr.msk.f32.gmra.mrb[4].mxu0 %vm1359_vm2, %v1346_v27 }
  0xbf   : > { %4201 = vmatprep.mubr.msk.f32.mxu0 %vm4507_vm1, %v4506_v3 }
  0xc4   : > { %v1358_v37 = vpop.permute.xlu0 %1357 }
  0xc5   : > { %4217 = vmatmul.mubr.msk.f32.gmra.mrb[6].mxu1 %vm1359_vm2, %v1358_v37 }
  0xc6   : > { %4221 = vmatprep.mubr.msk.f32.mxu1 %vm4507_vm1, %v4506_v3 }
  0xc8   : > { %v1348_v13 = vpop.permute.xlu1 %1347 }
  0xc9   : > { %4202 = vmatmul.mubr.msk.f32.gmra.mrb[6].mxu0 %vm1359_vm2, %v1348_v13  ;;  %4222 = vmatmul.mubr.msk.f32.vlgmr.msra.gmra.mrb[8].mxu1 %vm1359_vm2, %v4716_v49 }
  0xca   : > { %4204 = vmatprep.mubr.msk.f32.mxu0 %vm4507_vm1, %v4506_v3  ;;  %4224 = vmatprep.mubr.msk.f32.mxu1 %vm4507_vm1, %v4506_v3 }
  0xcb   : > { %4254 = vmatpush3.msk.msra.mxu1 %vm1378_vm0, %v4821_v6 }
  0xcc   : > { %4287 = vmatprep.subr.mxu1 %v4506_v3 }
  0xcd   : > { %4225 = vmatmul.mubr.msk.f32.gmra.mrb[10].mxu1 %vm1359_vm2, %v4745_v32 }
  0xce   : > { %4227 = vmatprep.mubr.msk.f32.mxu1 %vm4507_vm1, %v4506_v3 }
  0xcf   : > { %v1350_v17 = vpop.permute.xlu0 %1349 }
  0xd0   : > { %4205 = vmatmul.mubr.msk.f32.gmra.mrb[8].mxu0 %vm1359_vm2, %v1350_v17 }
  0xd1   : > { %4250 = vmatprep.mubr.msk.f32.mxu0 %vm1624_vm3, %v893_v16  ;;  %4228 = vmatmul.mubr.msk.f32.gmra.mrb[12].mxu1 %vm1359_vm2, %v4776_v14 }
  0xd2   : > { %4230 = vmatprep.mubr.msk.f32.mxu1 %vm4507_vm1, %v4506_v3 }
  0xd4   : > { %4251 = vmatmul.mubr.msk.f32.vlgmr.msra.gmra.mrb[10].mxu0 %vm1624_vm3, %v894_v18 }
  0xd5   : > { %4259 = vmatpush3.msra.mxu0 %v4663_v38  ;;  %4260 = vmatprep.mubr.msk.f32.mxu0 %vm4507_vm1, %v4506_v3 }
  0xd6   : > { %4347 = vmatprep.subr.bf16.mxu0 %v4509_v23  ;;  %4231 = vmatmul.mubr.msk.f32.gmra.mrb[14].mxu1 %vm1359_vm2, %v4803_v59 }
  0xd7   : > { %4233 = vmatprep.mubr.msk.f32.mxu1 %vm4507_vm1, %v4506_v3 }
  0xd8   : > { %4261 = vmatmul.mubr.msk.f32.vlgmr.msra.gmra.mrb[12].mxu0 %vm1624_vm3, %v4716_v49 }
  0xd9   : > { %4349 = vmatpush3.bf16.msra.mxu0 %v4348_v21  ;;  %4263 = vmatprep.mubr.msk.f32.mxu0 %vm4507_vm1, %v4506_v3 }
  0xda   : > { %4234 = vmatmul.mubr.msk.f32.gmra.mrb[16].mxu1 %vm1359_vm2, %v4811_v2 }
  0xdb   : > { %4236 = vmatprep.mubr.msk.f32.mxu1 %vm4507_vm1, %v4506_v3 }
  0xdc   : > { %4264 = vmatmul.mubr.msk.f32.gmra.mrb[14].mxu0 %vm1624_vm3, %v4745_v32 }
  0xdd   : > { %4266 = vmatprep.mubr.msk.f32.mxu0 %vm4507_vm1, %v4506_v3 }
  0xde   : > { %4237 = vmatmul.mubr.msk.f32.gmra.mrb[18].mxu1 %vm1359_vm2, %v4691_v22 }
  0xdf   : > { %4239 = vmatprep.mubr.msk.f32.mxu1 %vm4507_vm1, %v4506_v3 }
  0xe0   : > { %4267 = vmatmul.mubr.msk.f32.gmra.mrb[16].mxu0 %vm1624_vm3, %v4776_v14 }
  0xe1   : > { %4269 = vmatprep.mubr.msk.f32.mxu0 %vm4507_vm1, %v4506_v3 }
  0xe2   : > { %4240 = vmatmul.mubr.msk.f32.gmra.mrb[20].mxu1 %vm1359_vm2, %v4704_v35 }
  0xe3   : > { %4242 = vmatprep.mubr.msk.f32.mxu1 %vm4507_vm1, %v4506_v3 }
  0xe4   : > { %4270 = vmatmul.mubr.msk.f32.gmra.mrb[18].mxu0 %vm1624_vm3, %v4803_v59 }
  0xe5   : > { %4272 = vmatprep.mubr.msk.f32.mxu0 %vm4507_vm1, %v4506_v3 }
  0xe6   : > { %4243 = vmatmul.mubr.msk.f32.gmra.mrb[22].mxu1 %vm1359_vm2, %v4757_v48 }
  0xe7   : > { %4245 = vmatprep.mubr.msk.f32.mxu1 %vm4507_vm1, %v4506_v3 }
  0xe8   : > { %4273 = vmatmul.mubr.msk.f32.gmra.mrb[20].mxu0 %vm1624_vm3, %v4811_v2 }
  0xe9   : > { %4275 = vmatprep.mubr.msk.f32.mxu0 %vm4507_vm1, %v4506_v3 }
  0xea   : > { %4246 = vmatmul.mubr.msk.f32.gmra.mrb[24].mxu1 %vm1359_vm2, %v4795_v52 }
  0xeb   : > { %4255 = vmatprep.mubr.msk.f32.mxu1 %vm1359_vm2, %v893_v16 }
  0xec   : > { %4276 = vmatmul.mubr.msk.f32.gmra.mrb[22].mxu0 %vm1624_vm3, %v4691_v22 }
  0xed   : > { %4278 = vmatprep.mubr.msk.f32.mxu0 %vm4507_vm1, %v4506_v3 }
  0xee   : > { %4256 = vmatmul.mubr.msk.f32.vlgmr.msra.gmra.mrb[26].mxu1 %vm1359_vm2, %v894_v18 }
  0xef   : > { %4288 = vmatpush3.msk.msra.mxu1 %vm1378_vm0, %v4821_v6  ;;  %4289 = vmatprep.mubr.msk.f32.mxu1 %vm4507_vm1, %v4506_v3 }
  0xf0   : > { %4279 = vmatmul.mubr.msk.f32.gmra.mrb[24].mxu0 %vm1624_vm3, %v4704_v35 }
  0xf1   : > { %4281 = vmatprep.mubr.msk.f32.mxu0 %vm4507_vm1, %v4506_v3 }
  0xf2   : > { %4290 = vmatmul.mubr.msk.f32.vlgmr.msra.gmra.mrb[28].mxu1 %vm1359_vm2, %v4716_v49 }
  0xf3   : > { %4292 = vmatprep.mubr.msk.f32.mxu1 %vm4507_vm1, %v4506_v3 }
  0xf4   : > { %4282 = vmatmul.mubr.msk.f32.gmra.mrb[26].mxu0 %vm1624_vm3, %v4757_v48 }
  0xf5   : > { %4284 = vmatprep.mubr.msk.f32.mxu0 %vm4507_vm1, %v4506_v3 }
  0xf6   : > { %4293 = vmatmul.mubr.msk.f32.gmra.mrb[30].mxu1 %vm1359_vm2, %v4745_v32 }
  0xf7   : > { %4295 = vmatprep.mubr.msk.f32.mxu1 %vm4507_vm1, %v4506_v3 }
  0xf8   : > { %4285 = vmatmul.mubr.msk.f32.gmra.mrb[28].mxu0 %vm1624_vm3, %v4795_v52 }
  0xf9   : > { %4320 = vmatprep.mubr.msk.f32.mxu0 %vm4507_vm1, %v4506_v3 }
  0xfa   : > { %4296 = vmatmul.mubr.msk.f32.gmra.mrb[32].mxu1 %vm1359_vm2, %v4776_v14 }
  0xfb   : > { %4298 = vmatprep.mubr.msk.f32.mxu1 %vm4507_vm1, %v4506_v3 }
  0xfc   : > { %4321 = vmatmul.mubr.msk.f32.vlgmr.msra.gmra.mrb[30].mxu0 %vm2105_vm4, %v4716_v49 }
  0xfd   : > { %4323 = vmatprep.mubr.msk.f32.mxu0 %vm4507_vm1, %v4506_v3 }
  0xfe   : > { %4299 = vmatmul.mubr.msk.f32.gmra.mrb[34].mxu1 %vm1359_vm2, %v4803_v59 }
  0xff   : > { %4301 = vmatprep.mubr.msk.f32.mxu1 %vm4507_vm1, %v4506_v3 }
 0x100   : > { %4324 = vmatmul.mubr.msk.f32.gmra.mrb[32].mxu0 %vm2105_vm4, %v4745_v32 }
 0x101   : > { %4326 = vmatprep.mubr.msk.f32.mxu0 %vm4507_vm1, %v4506_v3 }
 0x102   : > { %4302 = vmatmul.mubr.msk.f32.gmra.mrb[36].mxu1 %vm1359_vm2, %v4811_v2 }
 0x103   : > { %4304 = vmatprep.mubr.msk.f32.mxu1 %vm4507_vm1, %v4506_v3 }
 0x104   : > { %4327 = vmatmul.mubr.msk.f32.gmra.mrb[34].mxu0 %vm2105_vm4, %v4776_v14 }
 0x105   : > { %4329 = vmatprep.mubr.msk.f32.mxu0 %vm4507_vm1, %v4506_v3 }
 0x106   : > { %4305 = vmatmul.mubr.msk.f32.gmra.mrb[38].mxu1 %vm1359_vm2, %v4691_v22 }
 0x107   : > { %4307 = vmatprep.mubr.msk.f32.mxu1 %vm4507_vm1, %v4506_v3 }
 0x108   : > { %4330 = vmatmul.mubr.msk.f32.gmra.mrb[36].mxu0 %vm2105_vm4, %v4803_v59 }
 0x109   : > { %4332 = vmatprep.mubr.msk.f32.mxu0 %vm4507_vm1, %v4506_v3 }
 0x10a   : > { %4308 = vmatmul.mubr.msk.f32.gmra.mrb[40].mxu1 %vm1359_vm2, %v4704_v35 }
 0x10b   : > { %4310 = vmatprep.mubr.msk.f32.mxu1 %vm4507_vm1, %v4506_v3 }
 0x10c   : > { %4333 = vmatmul.mubr.msk.f32.gmra.mrb[38].mxu0 %vm2105_vm4, %v4811_v2 }
 0x10d   : > { %4335 = vmatprep.mubr.msk.f32.mxu0 %vm4507_vm1, %v4506_v3 }
 0x10e   : > { %4311 = vmatmul.mubr.msk.f32.gmra.mrb[42].mxu1 %vm1359_vm2, %v4757_v48 }
 0x10f   : > { %4313 = vmatprep.mubr.msk.f32.mxu1 %vm4507_vm1, %v4506_v3 }
 0x110   : > { %4336 = vmatmul.mubr.msk.f32.gmra.mrb[40].mxu0 %vm2105_vm4, %v4691_v22 }
 0x111   : > { %4338 = vmatprep.mubr.msk.f32.mxu0 %vm4507_vm1, %v4506_v3 }
 0x112   : > { %4314 = vmatmul.mubr.msk.f32.gmra.mrb[44].mxu1 %vm1359_vm2, %v4795_v52 }
 0x114   : > { %4339 = vmatmul.mubr.msk.f32.gmra.mrb[42].mxu0 %vm2105_vm4, %v4704_v35 }
 0x115   : > { %4341 = vmatprep.mubr.msk.f32.mxu0 %vm4507_vm1, %v4506_v3 }
 0x118   : > { %4342 = vmatmul.mubr.msk.f32.gmra.mrb[44].mxu0 %vm2105_vm4, %v4757_v48 }
 0x119   : > { %4344 = vmatprep.mubr.msk.f32.mxu0 %vm4507_vm1, %v4506_v3 }
 0x11c   : > { %4345 = vmatmul.mubr.msk.f32.gmra.mrb[46].mxu0 %vm2105_vm4, %v4795_v52 }
 0x176   : > { %v1473_v38 = vpop.f32.mrb[0].mxu1 }
 0x177   : > { %v4209_v22 = vpop.f32.mrb[1].mxu1 }
 0x17a   : > { %v1478_v49 = vpop.f32.mrb[2].mxu1 }
 0x17b   : > { %v4212_v32 = vpop.f32.mrb[3].mxu1 }
 0x17c   : > { %v4124_v32 = vld [vmem:[%s5540_s5] ss:$0 sm:$0xff] }
 0x17d   : > { %v1448_v14 = vpop.f32.mrb[0].mxu0 }
 0x17e   : > { %v4194_v25 = vpop.f32.mrb[1].mxu0 }
 0x186   : > { %v1453_v26 = vpop.f32.mrb[2].mxu0 }
 0x187   : > { %v4197_v35 = vpop.f32.mrb[3].mxu0 }
 0x18a   : > { %v1483_v28 = vpop.f32.mrb[4].mxu1 }
 0x18b   : > { %v4215_v24 = vpop.f32.mrb[5].mxu1 }
 0x18c   : > { %v3333_v24 = vcombine.high %v4124_v32, %v4124_v32 }
 0x191   : > { %v1458_v29 = vpop.f32.mrb[4].mxu0 }
 0x192   : > { %v4200_v30 = vpop.f32.mrb[5].mxu0 }
 0x198   : > { %v1488_v31 = vpop.f32.mrb[6].mxu1 }
 0x199   : > { %v4218_v48 = vpop.f32.mrb[7].mxu1 }
 0x19c   : > { %v1463_v33 = vpop.f32.mrb[6].mxu0  ;;  %v1579_v34 = vpop.f32.mrb[8].mxu1 }
 0x19d   : > { %v4203_v3 = vpop.f32.mrb[7].mxu0  ;;  %v5016_v36 = vadd.f32 %v1579_v34, %v1448_v14  ;;  %v4223_v39 = vpop.f32.mrb[9].mxu1 }
 0x19e   : > { %v3340_v39 = vrot.slane %v4124_v32, %v4620_v7 }
 0x1a0   : > { %v1584_v40 = vpop.f32.mrb[10].mxu1 }
 0x1a1   : > { %v5018_v15 = vadd.f32 %v1584_v40, %v1453_v26  ;;  %v4226_v41 = vpop.f32.mrb[11].mxu1 }
 0x1a3   : > { %v1468_v42 = vpop.f32.mrb[8].mxu0 }
 0x1a4   : > { %v4206_v43 = vpop.f32.mrb[9].mxu0  ;;  %v1589_v45 = vpop.f32.mrb[12].mxu1 }
 0x1a5   : > { %v5020_v44 = vadd.f32 %v1589_v45, %v1458_v29  ;;  %v4229_v46 = vpop.f32.mrb[13].mxu1 }
 0x1a7   : > { %v4252_v47 = vpop.f32.mrb[10].mxu0 }
 0x1a8   : > { %v2061_v50 = vrot.slane %v4252_v47, 1  ;;  %v5022_v51 = vpop.f32.mrb[11].mxu0 }
 0x1a9   : > { %v2060_v52 = vrot.slane %v5022_v51, 1  ;;  %v1594_v53 = vpop.f32.mrb[14].mxu1 }
 0x1aa   : > { %v5025_v8 = vadd.f32 %v1594_v53, %v1463_v33  ;;  %v4232_v54 = vpop.f32.mrb[15].mxu1 }
 0x1ab   : > { %v1874_v55 = vpop.f32.mrb[12].mxu0  ;;  %v5030_v56 = vsel %vm2034_vm5, %v2060_v52, %v2061_v50  ;;  %v3348_v54 = vcombine.high %v3340_v39, %v3340_v39 }
 0x1ac   : > { %v4262_v57 = vpop.f32.mrb[13].mxu0 }
 0x1ad   : > { %v1599_v58 = vpop.f32.mrb[16].mxu1 }
 0x1ae   : > { %v5032_v59 = vadd.f32 %v1599_v58, %v1468_v42  ;;  %v4235_v60 = vpop.f32.mrb[17].mxu1  ;;  %v3347_v42 = vrot.slane %v3333_v24, %v4620_v7 }
 0x1af   : > { %v1878_v61 = vpop.f32.mrb[14].mxu0 }
 0x1b0   : > { %v4265_v62 = vpop.f32.mrb[15].mxu0  ;;  %v2035_v4 = vrot.slane %v1878_v61, 1  ;;  %v3349_v57 = vcombine.high %v3347_v42, %v3347_v42 }
 0x1b1   : > { %v1604_v63 = vpop.f32.mrb[18].mxu1 }
 0x1b2   : > { %v5034_v0 = vadd.f32 %v1604_v63, %v1473_v38  ;;  %v4238_v1 = vpop.f32.mrb[19].mxu1 }
 0x1b3   : > { %v1883_v2 = vpop.f32.mrb[16].mxu0 }
 0x1b4   : > { %v2036_v5 = vrot.slane %v1883_v2, 1  ;;  %v4268_v6 = vpop.f32.mrb[17].mxu0 }
 0x1b5   : > { %v1609_v9 = vpop.f32.mrb[20].mxu1 }
 0x1b6   : > { %v5036_v10 = vadd.f32 %v1609_v9, %v1478_v49  ;;  %v4241_v11 = vpop.f32.mrb[21].mxu1  ;;  %v2037_v12 = vsel %vm2034_vm5, %v2035_v4, %v2036_v5  ;;  %v5068_v4 = vrot.slane %v3340_v39, %v4620_v7 }
 0x1b7   : > { %v1888_v27 = vpop.f32.mrb[18].mxu0  ;;  %v5077_v11 = vrot.slane %v3347_v42, %v4620_v7 }
 0x1b8   : > { %v2038_v37 = vrot.slane %v1888_v27, 1  ;;  %v4271_v13 = vpop.f32.mrb[19].mxu0  ;;  %v5080_v27 = vrot.slane %v3349_v57, %v4620_v7 }
 0x1b9   : > { %v1614_v16 = vpop.f32.mrb[22].mxu1 }
 0x1ba   : > { %v5039_v17 = vadd.f32 %v1614_v16, %v1483_v28  ;;  %v4244_v18 = vpop.f32.mrb[23].mxu1  ;;  %v5042_v19 = vsel %vm2034_vm5, %v2036_v5, %v2038_v37  ;;  %v5071_v5 = vrot.slane %v3348_v54, %v4620_v7 }
 0x1bb   : > { %v1893_v20 = vpop.f32.mrb[20].mxu0 }
 0x1bc   : > { %v2040_v21 = vrot.slane %v1893_v20, 1  ;;  %v4274_v23 = vpop.f32.mrb[21].mxu0 }
 0x1bd   : > { %v1619_v38 = vpop.f32.mrb[24].mxu1 }
 0x1be   : > { %v1620_v22 = vadd.f32 %v1619_v38, %v1488_v31  ;;  %v4247_v49 = vpop.f32.mrb[25].mxu1  ;;  %v5048_v14 = vsel %vm2034_vm5, %v2038_v37, %v2040_v21 }
 0x1bf   : > { %v1898_v25 = vpop.f32.mrb[22].mxu0  ;;  %v5100_v49 = vcombine.high %v5071_v5, %v5071_v5 }
 0x1c0   : > { %v2042_v26 = vrot.slane %v1898_v25, 1  ;;  %v4277_v35 = vpop.f32.mrb[23].mxu0  ;;  %v5107_v25 = vcombine.high %v5077_v11, %v5077_v11 }
 0x1c1   : > { %v4257_v28 = vpop.f32.mrb[26].mxu1 }
 0x1c2   : > { %v2100_v29 = vrot.slane %v4257_v28, 1  ;;  %v5050_v30 = vpop.f32.mrb[27].mxu1  ;;  %v5053_v48 = vsel %vm2034_vm5, %v2040_v21, %v2042_v26 }
 0x1c3   : > { %v1903_v31 = vpop.f32.mrb[24].mxu0  ;;  %v5542_v33 = vrot.slane %v5050_v30, 1 }
 0x1c4   : > { %v2044_v34 = vrot.slane %v1903_v31, 1  ;;  %v4280_v3 = vpop.f32.mrb[25].mxu0 }
 0x1c5   : > { %v2101_v40 = vsel %vm2034_vm5, %v5542_v33, %v2100_v29  ;;  %v1983_v41 = vpop.f32.mrb[28].mxu1 }
 0x1c6   : > { %v2752_v43 = vadd.f32 %v2101_v40, %v1620_v22  ;;  %v4291_v45 = vpop.f32.mrb[29].mxu1  ;;  %v5062_v46 = vsel %vm2034_vm5, %v2042_v26, %v2044_v34  ;;  %v5096_v22 = vcombine.high %v5068_v4, %v5068_v4 }
 0x1c7   : > { %v1908_v47 = vpop.f32.mrb[26].mxu0 }
 0x1c8   : > { %v2046_v50 = vrot.slane %v1908_v47, 1  ;;  %v4283_v53 = vpop.f32.mrb[27].mxu0  ;;  %v3150_v60 = vcombine.high %v2752_v43, %v2752_v43  ;;  %v5074_v6 = vrot.slane %v2752_v43, %v4620_v7 }
 0x1c9   : > { %v1987_v55 = vpop.f32.mrb[30].mxu1 }
 0x1ca   : > { %v4294_v58 = vpop.f32.mrb[31].mxu1  ;;  %v5065_v62 = vsel %vm2034_vm5, %v2044_v34, %v2046_v50  ;;  %v2074_v2 = vrot.slane %v1987_v55, 1  ;;  %v5091_v20 = vrot.slane %v3150_v60, %v4620_v7  ;;  %v5117_v35 = vrot.slane %v5074_v6, %v4620_v7 }
 0x1cb   : > { %v1913_v61 = vpop.f32.mrb[28].mxu0 }
 0x1cc   : > { %v2048_v63 = vrot.slane %v1913_v61, 1  ;;  %v4286_v1 = vpop.f32.mrb[29].mxu0  ;;  %5549 = vst [vmem:[#allocation5_spill] sm:$0xff] %v5091_v20  ;;  %v5125_v34 = vrot.slane %v5091_v20, %v4620_v7 }
 0x1cd   : > { %v1992_v9 = vpop.f32.mrb[32].mxu1 }
 0x1ce   : > { %v2075_v37 = vrot.slane %v1992_v9, 1  ;;  %v4297_v13 = vpop.f32.mrb[33].mxu1  ;;  %v5083_v16 = vsel %vm2034_vm5, %v2046_v50, %v2048_v63  ;;  %v5088_v18 = vsel %vm2034_vm5, %v2048_v63, %v2060_v52  ;;  %5550 = vst [vmem:[#allocation6_spill] sm:$0xff] %v5125_v34 }
 0x1cf   : > { %v2190_v21 = vpop.f32.mrb[30].mxu0 }
 0x1d0   : > { %v2076_v23 = vsel %vm2034_vm5, %v2074_v2, %v2075_v37  ;;  %v2191_v38 = vadd.f32 %v2190_v21, %v2037_v12  ;;  %v4322_v32 = vpop.f32.mrb[31].mxu0  ;;  %v5113_v12 = vcombine.high %v5080_v27, %v5080_v27 }
 0x1d1   : > { %v2744_v52 = vadd.f32 %v2076_v23, %v5016_v36  ;;  %v5109_v26 = vpop.f32.mrb[34].mxu1 }
 0x1d2   : > { %v2243_v28 = vcombine.high %v2191_v38, %v2191_v38  ;;  %v2250_v24 = vrot.slane %v2191_v38, %v4620_v7  ;;  %v2077_v29 = vrot.slane %v5109_v26, 1  ;;  %v4300_v36 = vpop.f32.mrb[35].mxu1 }
 0x1d3   : > { %v2762_v3 = vcombine.high %v2744_v52, %v2744_v52  ;;  %v2769_v39 = vrot.slane %v2744_v52, %v4620_v7  ;;  %v5128_v40 = vpop.f32.mrb[32].mxu0 }
 0x1d4   : > { %v2257_v41 = vrot.slane %v2243_v28, %v4620_v7  ;;  %v2258_v42 = vcombine.high %v2250_v24, %v2250_v24  ;;  %v2266_v43 = vrot.slane %v2250_v24, %v4620_v7  ;;  %v2078_v45 = vsel %vm2034_vm5, %v2075_v37, %v2077_v29  ;;  %v4325_v47 = vpop.f32.mrb[33].mxu0 }
 0x1d5   : > { %v2776_v50 = vrot.slane %v2762_v3, %v4620_v7  ;;  %v2777_v53 = vcombine.high %v2769_v39, %v2769_v39  ;;  %v2785_v54 = vrot.slane %v2769_v39, %v4620_v7  ;;  %v2745_v55 = vadd.f32 %v2078_v45, %v5018_v15  ;;  %v5138_v57 = vpop.f32.mrb[36].mxu1 }
 0x1d6   : > { %v2259_v58 = vcombine.high %v2257_v41, %v2257_v41  ;;  %v2273_v60 = vrot.slane %v2257_v41, %v4620_v7  ;;  %v2280_v61 = vrot.slane %v2258_v42, %v4620_v7  ;;  %v2288_v63 = vcombine.high %v2266_v43, %v2266_v43  ;;  %v4303_v1 = vpop.f32.mrb[37].mxu1 }
 0x1d7   : > { %v2778_v2 = vcombine.high %v2776_v50, %v2776_v50  ;;  %v2792_v9 = vrot.slane %v2776_v50, %v4620_v7  ;;  %v2799_v37 = vrot.slane %v2777_v53, %v4620_v7  ;;  %v2807_v13 = vcombine.high %v2785_v54, %v2785_v54  ;;  %v5144_v21 = vpop.f32.mrb[34].mxu0 }
 0x1d8   : > { %v2287_v23 = vrot.slane %v2259_v58, %v4620_v7  ;;  %v2289_v15 = vcombine.high %v2273_v60, %v2273_v60  ;;  %v2290_v38 = vcombine.high %v2280_v61, %v2280_v61  ;;  %v2811_v32 = vcombine.high %v2745_v55, %v2745_v55  ;;  %v4328_v52 = vpop.f32.mrb[35].mxu0 }
 0x1d9   : > { %v2806_v28 = vrot.slane %v2778_v2, %v4620_v7  ;;  %v2808_v24 = vcombine.high %v2792_v9, %v2792_v9  ;;  %v2809_v36 = vcombine.high %v2799_v37, %v2799_v37  ;;  %v3263_v3 = vadd.f32 %v2799_v37, %v2266_v43  ;;  %v5148_v39 = vpop.f32.mrb[38].mxu1 }
 0x1da   : > { %v2291_v41 = vcombine.high %v2287_v23, %v2287_v23  ;;  %v3264_v42 = vadd.f32 %v2807_v13, %v2280_v61  ;;  %v3266_v45 = vadd.f32 %v2792_v9, %v2290_v38  ;;  %v2818_v47 = vrot.slane %v2745_v55, %v4620_v7  ;;  %v4306_v50 = vpop.f32.mrb[39].mxu1 }
 0x1db   : > { %v2810_v53 = vcombine.high %v2806_v28, %v2806_v28  ;;  %v3265_v54 = vadd.f32 %v2809_v36, %v2288_v63  ;;  %v3267_v58 = vadd.f32 %v2806_v28, %v2273_v60  ;;  %v3268_v1 = vadd.f32 %v2808_v24, %v2287_v23  ;;  %v5151_v31 = vpop.f32.mrb[36].mxu0 }
 0x1dc   : > { %v3390_v52 = vadd.f32 %v5068_v4, %v3263_v3  ;;  %v3391_v2 = vadd.f32 %v5071_v5, %v3264_v42  ;;  %v3393_v43 = vadd.f32 %v5100_v49, %v3266_v45  ;;  %v2825_v37 = vrot.slane %v2811_v32, %v4620_v7  ;;  %v4331_v51 = vpop.f32.mrb[37].mxu0 }
 0x1dd   : > { %v3269_v61 = vadd.f32 %v2810_v53, %v2289_v15  ;;  %v3392_v9 = vadd.f32 %v5096_v22, %v3265_v54  ;;  %v3394_v55 = vadd.f32 %v5077_v11, %v3267_v58  ;;  %v3395_v63 = vadd.f32 %v5080_v27, %v3268_v1  ;;  %v5160_v60 = vpop.f32.mrb[40].mxu1 }
 0x1de   : > { %v3518_v13 = vcombine.low %v3390_v52, %v3391_v2  ;;  %v2826_v23 = vcombine.high %v2818_v47, %v2818_v47  ;;  %v2827_v38 = vcombine.high %v2825_v37, %v2825_v37  ;;  %v2834_v28 = vrot.slane %v2818_v47, %v4620_v7  ;;  %v4309_v24 = vpop.f32.mrb[41].mxu1 }
 0x1df   : > { %v3396_v36 = vadd.f32 %v5107_v25, %v3269_v61  ;;  %v3519_v3 = vcombine.low %v3392_v9, %v3393_v43  ;;  %v3520_v32 = vcombine.low %v3394_v55, %v3395_v63  ;;  %v2841_v51 = vrot.slane %v2825_v37, %v4620_v7  ;;  %v5165_v15 = vpop.f32.mrb[38].mxu0 }
 0x1e0   : > { %v3528_v42 = vrot.slane %v3518_v13, %v4620_v7  ;;  %v3270_v45 = vadd.f32 %v2834_v28, %v2291_v41  ;;  %v2196_v50 = vadd.f32 %v5128_v40, %v5042_v19  ;;  %v2848_v53 = vrot.slane %v2826_v23, %v4620_v7  ;;  %v4334_v54 = vpop.f32.mrb[39].mxu0 }
 0x1e1   : > { %v3535_v47 = vrot.slane %v3519_v3, %v4620_v7  ;;  %v3542_v58 = vrot.slane %v3520_v32, %v4620_v7  ;;  %v2855_v1 = vrot.slane %v2827_v38, %v4620_v7  ;;  %v2856_v52 = vcombine.high %v2834_v28, %v2834_v28  ;;  %v5174_v2 = vpop.f32.mrb[42].mxu1 }
 0x1e2   : > { %v3397_v43 = vadd.f32 %v5113_v12, %v3270_v45  ;;  %v2292_v37 = vcombine.high %v2196_v50, %v2196_v50  ;;  %v2299_v41 = vrot.slane %v2196_v50, %v4620_v7  ;;  %v2857_v61 = vcombine.high %v2841_v51, %v2841_v51  ;;  %v4312_v19 = vpop.f32.mrb[43].mxu1 }
 0x1e3   : > { %v3550_v40 = vcombine.low %v3528_v42, %v3535_v47  ;;  %v2858_v9 = vcombine.high %v2848_v53, %v2848_v53  ;;  %v2859_v55 = vcombine.high %v2855_v1, %v2855_v1  ;;  %v5543_v63 = vrot.slane %v5138_v57, 1  ;;  %v5179_v13 = vpop.f32.mrb[40].mxu0 }
 0x1e4   : > { %v3521_v23 = vcombine.low %v3396_v36, %v3397_v43  ;;  %v2306_v38 = vrot.slane %v2292_v37, %v4620_v7  ;;  %v2307_v28 = vcombine.high %v2299_v41, %v2299_v41  ;;  %v2315_v24 = vrot.slane %v2299_v41, %v4620_v7  ;;  %v4337_v3 = vpop.f32.mrb[41].mxu0 }
 0x1e5   : > { %v3558_v32 = vrot.slane %v3550_v40, %v4620_v7  ;;  %v2080_v42 = vsel %vm2034_vm5, %v2077_v29, %v5543_v63  ;;  %v2201_v45 = vadd.f32 %v5144_v21, %v5048_v14  ;;  %v5193_v50 = vpop.f32.mrb[44].mxu1 }
 0x1e6   : > { %v3549_v53 = vrot.slane %v3521_v23, %v4620_v7  ;;  %v2308_v54 = vcombine.high %v2306_v38, %v2306_v38  ;;  %v2322_v47 = vrot.slane %v2306_v38, %v4620_v7  ;;  %v2329_v43 = vrot.slane %v2307_v28, %v4620_v7  ;;  %v4315_v37 = vpop.f32.mrb[45].mxu1 }
 0x1e7   : > { %v2337_v41 = vcombine.high %v2315_v24, %v2315_v24  ;;  %v2746_v26 = vadd.f32 %v2080_v42, %v5020_v44  ;;  %v2341_v19 = vcombine.high %v2201_v45, %v2201_v45  ;;  %v2348_v29 = vrot.slane %v2201_v45, %v4620_v7  ;;  %v5200_v40 = vpop.f32.mrb[42].mxu0 }
 0x1e8   : > { %v3551_v14 = vcombine.low %v3542_v58, %v3549_v53  ;;  %v2336_v21 = vrot.slane %v2308_v54, %v4620_v7  ;;  %v2338_v23 = vcombine.high %v2322_v47, %v2322_v47  ;;  %v2339_v3 = vcombine.high %v2329_v43, %v2329_v43  ;;  %v4340_v33 = vpop.f32.mrb[43].mxu0 }
 0x1e9   : > { %v3271_v38 = vadd.f32 %v2856_v52, %v2329_v43  ;;  %v3272_v63 = vadd.f32 %v2858_v9, %v2337_v41  ;;  %v3274_v28 = vadd.f32 %v2855_v1, %v2322_v47  ;;  %v2860_v37 = vcombine.high %v2746_v26, %v2746_v26 }
 0x1ea   : > { %v3565_v24 = vrot.slane %v3551_v14, %v4620_v7  ;;  %v2340_v44 = vcombine.high %v2336_v21, %v2336_v21  ;;  %v3273_v42 = vadd.f32 %v2841_v51, %v2339_v3  ;;  %v3275_v36 = vadd.f32 %v2857_v61, %v2336_v21 }
 0x1eb   : > { %v3276_v45 = vadd.f32 %v2859_v55, %v2338_v23  ;;  %v3398_v34 = vadd.f32 %v5068_v4, %v3271_v38  ;;  %v3399_v20 = vadd.f32 %v5071_v5, %v3272_v63  ;;  %v3401_v58 = vadd.f32 %v5100_v49, %v3274_v28  ;;  %v5209_v53 = vpop.f32.mrb[44].mxu0 }
 0x1ec   : > { %v3566_v54 = vcombine.low %v3558_v32, %v3565_v24  ;;  %v3400_v33 = vadd.f32 %v5096_v22, %v3273_v42  ;;  %v3402_v1 = vadd.f32 %v5077_v11, %v3275_v36  ;;  %v2867_v52 = vrot.slane %v2746_v26, %v4620_v7  ;;  %v4343_v9 = vpop.f32.mrb[45].mxu0 }
 0x1ed   : > { %v3403_v51 = vadd.f32 %v5080_v27, %v3276_v45  ;;  %v3567_v61 = vcombine.low %v3398_v34, %v3399_v20  ;;  %v2874_v55 = vrot.slane %v2860_v37, %v4620_v7  ;;  %v2355_v47 = vrot.slane %v2341_v19, %v4620_v7 }
 0x1ee   : > { %3918 = vst.msk [vmem:[%s5217_s30] sm:$0xff] %vm1624_vm3, %v3566_v54  ;;  %v3568_v63 = vcombine.low %v3400_v33, %v3401_v58  ;;  %v2875_v32 = vcombine.high %v2867_v52, %v2867_v52  ;;  %v2883_v43 = vrot.slane %v2867_v52, %v4620_v7  ;;  %v2356_v36 = vcombine.high %v2348_v29, %v2348_v29 }
 0x1ef   : > { %v3569_v41 = vcombine.low %v3402_v1, %v3403_v51  ;;  %v3577_v26 = vrot.slane %v3567_v61, %v4620_v7  ;;  %v2876_v14 = vcombine.high %v2874_v55, %v2874_v55  ;;  %v2357_v21 = vcombine.high %v2355_v47, %v2355_v47  ;;  %v5223_v20 = vpop.f32.mrb[46].mxu0 }
 0x1f0   : > { %v3584_v34 = vrot.slane %v3568_v63, %v4620_v7  ;;  %v3277_v19 = vadd.f32 %v2883_v43, %v2340_v44  ;;  %v2364_v23 = vrot.slane %v2348_v29, %v4620_v7  ;;  %v2371_v3 = vrot.slane %v2355_v47, %v4620_v7  ;;  %v4346_v38 = vpop.f32.mrb[47].mxu0 }
 0x1f1   : > { %v2378_v28 = vrot.slane %v2356_v36, %v4620_v7  ;;  %v2385_v37 = vrot.slane %v2357_v21, %v4620_v7  ;;  %v2890_v24 = vrot.slane %v2874_v55, %v4620_v7  ;;  %v2897_v42 = vrot.slane %v2875_v32, %v4620_v7 }
 0x1f2   : > { %v3599_v45 = vcombine.low %v3577_v26, %v3584_v34  ;;  %v2386_v58 = vcombine.high %v2364_v23, %v2364_v23  ;;  %v2387_v54 = vcombine.high %v2371_v3, %v2371_v3  ;;  %v2904_v33 = vrot.slane %v2876_v14, %v4620_v7 }
 0x1f3   : > { %v2388_v1 = vcombine.high %v2378_v28, %v2378_v28  ;;  %v2389_v44 = vcombine.high %v2385_v37, %v2385_v37  ;;  %v2905_v52 = vcombine.high %v2890_v24, %v2890_v24  ;;  %v2906_v29 = vcombine.high %v2897_v42, %v2897_v42 }
 0x1f4   : > { %v3607_v9 = vrot.slane %v3599_v45, %v4620_v7  ;;  %v2907_v51 = vcombine.high %v2904_v33, %v2904_v33  ;;  %v3278_v61 = vadd.f32 %v2897_v42, %v2364_v23  ;;  %v3281_v47 = vadd.f32 %v2904_v33, %v2371_v3 }
 0x1f5   : > { %v3279_v63 = vadd.f32 %v2906_v29, %v2386_v58  ;;  %v3280_v43 = vadd.f32 %v2890_v24, %v2388_v1  ;;  %v3282_v36 = vadd.f32 %v2905_v52, %v2385_v37  ;;  %v3404_v55 = vadd.f32 %v5107_v25, %v3277_v19 }
 0x1f6   : > { %v3283_v32 = vadd.f32 %v2907_v51, %v2387_v54  ;;  %v3405_v26 = vadd.f32 %v5113_v12, %v3278_v61  ;;  %v3408_v21 = vadd.f32 %v5096_v22, %v3281_v47  ;;  %v3591_v14 = vrot.slane %v3569_v41, %v4620_v7 }
 0x1f7   : > { %v3406_v34 = vadd.f32 %v5068_v4, %v3279_v63  ;;  %v3407_v38 = vadd.f32 %v5071_v5, %v3280_v43  ;;  %v3409_v28 = vadd.f32 %v5100_v49, %v3282_v36  ;;  %v5551_v23 = vrot.slane %v5148_v39, 1 }
 0x1f8   : > { %v5552_v3 = vrot.slane %v5138_v57, 1  ;;  %v3410_v19 = vadd.f32 %v5077_v11, %v3283_v32  ;;  %v3570_v24 = vcombine.low %v3404_v55, %v3405_v26  ;;  %v2206_v41 = vadd.f32 %v5151_v31, %v5053_v48 }
 0x1f9   : > { %v3616_v45 = vcombine.low %v3406_v34, %v3407_v38  ;;  %v3617_v58 = vcombine.low %v3408_v21, %v3409_v28  ;;  %v2083_v54 = vrot.slane %v5160_v60, 1  ;;  %v2211_v33 = vadd.f32 %v5165_v15, %v5062_v46 }
 0x1fa   : > { %v2082_v37 = vsel %vm2034_vm5, %v5552_v3, %v5551_v23  ;;  %v3598_v1 = vrot.slane %v3570_v24, %v4620_v7  ;;  %v2390_v29 = vcombine.high %v2206_v41, %v2206_v41  ;;  %v2397_v61 = vrot.slane %v2206_v41, %v4620_v7 }
 0x1fb   : > { %v2747_v42 = vadd.f32 %v2082_v37, %v5025_v8  ;;  %v3626_v51 = vrot.slane %v3616_v45, %v4620_v7  ;;  %v3633_v8 = vrot.slane %v3617_v58, %v4620_v7  ;;  %v5553_v48 = vmov %v5551_v23 }
 0x1fc   : > { %v2084_v31 = vsel %vm2034_vm5, %v5553_v48, %v2083_v54  ;;  %v3600_v47 = vcombine.low %v3591_v14, %v3598_v1  ;;  %v2404_v36 = vrot.slane %v2390_v29, %v4620_v7  ;;  %v2405_v55 = vcombine.high %v2397_v61, %v2397_v61 }
 0x1fd   : > { %v2908_v57 = vcombine.high %v2747_v42, %v2747_v42  ;;  %v2915_v52 = vrot.slane %v2747_v42, %v4620_v7  ;;  %v3648_v43 = vcombine.low %v3626_v51, %v3633_v8  ;;  %v2413_v32 = vrot.slane %v2397_v61, %v4620_v7 }
 0x1fe   : > { %v3614_v26 = vrot.slane %v3600_v47, %v4620_v7  ;;  %v2406_v38 = vcombine.high %v2404_v36, %v2404_v36  ;;  %v2420_v28 = vrot.slane %v2404_v36, %v4620_v7  ;;  %v2427_v23 = vrot.slane %v2405_v55, %v4620_v7 }
 0x1ff   : > { %v2922_v46 = vrot.slane %v2908_v57, %v4620_v7  ;;  %v2923_v15 = vcombine.high %v2915_v52, %v2915_v52  ;;  %v2931_v63 = vrot.slane %v2915_v52, %v4620_v7  ;;  %v5270_v14 = vrot.slane %v3648_v43, %v4620_v7 }
 0x200   : > { %v3615_v3 = vcombine.low %v3607_v9, %v3614_v26  ;;  %v2434_v41 = vrot.slane %v2406_v38, %v4620_v7  ;;  %v2435_v45 = vcombine.high %v2420_v28, %v2420_v28  ;;  %v2436_v58 = vcombine.high %v2427_v23, %v2427_v23 }
 0x201   : > { %v2924_v21 = vcombine.high %v2922_v46, %v2922_v46  ;;  %v2938_v39 = vrot.slane %v2922_v46, %v4620_v7  ;;  %v3284_v34 = vadd.f32 %v2931_v63, %v2389_v44  ;;  %v2945_v24 = vrot.slane %v2923_v15, %v4620_v7 }
 0x202   : > { %v2953_v44 = vcombine.high %v2931_v63, %v2931_v63  ;;  %3919 = vst.msk [vmem:[%s5217_s30 + $0x8] sm:$0xff] %vm1624_vm3, %v3615_v3  ;;  %v2437_v51 = vcombine.high %v2434_v41, %v2434_v41  ;;  %v2438_v26 = vcombine.high %v2211_v33, %v2211_v33 }
 0x203   : > { %v3411_v37 = vadd.f32 %v5080_v27, %v3284_v34  ;;  %v2952_v42 = vrot.slane %v2924_v21, %v4620_v7  ;;  %v2954_v57 = vcombine.high %v2938_v39, %v2938_v39  ;;  %v3285_v29 = vadd.f32 %v2945_v24, %v2413_v32 }
 0x204   : > { %v3286_v8 = vadd.f32 %v2953_v44, %v2427_v23  ;;  %v3287_v9 = vadd.f32 %v2938_v39, %v2436_v58  ;;  %v2445_v21 = vrot.slane %v2211_v33, %v4620_v7  ;;  %v2452_v3 = vrot.slane %v2438_v26, %v4620_v7 }
 0x205   : > { %v3618_v1 = vcombine.low %v3410_v19, %v3411_v37  ;;  %v2955_v52 = vcombine.high %v2952_v42, %v2952_v42  ;;  %v3288_v61 = vadd.f32 %v2952_v42, %v2420_v28  ;;  %v3289_v48 = vadd.f32 %v2954_v57, %v2434_v41 }
 0x206   : > { %v3412_v46 = vadd.f32 %v5107_v25, %v3285_v29  ;;  %v3413_v43 = vadd.f32 %v5113_v12, %v3286_v8  ;;  %v3414_v63 = vadd.f32 %v5068_v4, %v3287_v9  ;;  %v2748_v19 = vadd.f32 %v2084_v31, %v5032_v59 }
 0x207   : > { %v3290_v47 = vadd.f32 %v2955_v52, %v2435_v45  ;;  %v3640_v15 = vrot.slane %v3618_v1, %v4620_v7  ;;  %v3415_v36 = vadd.f32 %v5071_v5, %v3288_v61  ;;  %v3416_v55 = vadd.f32 %v5096_v22, %v3289_v48 }
 0x208   : > { %v3619_v39 = vcombine.low %v3412_v46, %v3413_v43  ;;  %v2956_v38 = vcombine.high %v2748_v19, %v2748_v19  ;;  %v2963_v28 = vrot.slane %v2748_v19, %v4620_v7  ;;  %v2453_v37 = vcombine.high %v2445_v21, %v2445_v21 }
 0x209   : > { %v3417_v32 = vadd.f32 %v5100_v49, %v3290_v47  ;;  %v3665_v34 = vcombine.low %v3414_v63, %v3415_v36  ;;  %v2461_v24 = vrot.slane %v2445_v21, %v4620_v7  ;;  %v2454_v58 = vcombine.high %v2452_v3, %v2452_v3 }
 0x20a   : > { %v3647_v59 = vrot.slane %v3619_v39, %v4620_v7  ;;  %v2970_v42 = vrot.slane %v2956_v38, %v4620_v7  ;;  %v2971_v41 = vcombine.high %v2963_v28, %v2963_v28  ;;  %v2979_v45 = vrot.slane %v2963_v28, %v4620_v7 }
 0x20b   : > { %v3666_v23 = vcombine.low %v3416_v55, %v3417_v32  ;;  %v3675_v31 = vrot.slane %v3665_v34, %v4620_v7  ;;  %v2468_v44 = vrot.slane %v2452_v3, %v4620_v7  ;;  %v2475_v29 = vrot.slane %v2453_v37, %v4620_v7 }
 0x20c   : > { %v3649_v1 = vcombine.low %v3640_v15, %v3647_v59  ;;  %v2972_v57 = vcombine.high %v2970_v42, %v2970_v42  ;;  %v2986_v52 = vrot.slane %v2970_v42, %v4620_v7  ;;  %v3291_v9 = vadd.f32 %v2979_v45, %v2437_v51 }
 0x20d   : > { %v3682_v33 = vrot.slane %v3666_v23, %v4620_v7  ;;  %v2482_v61 = vrot.slane %v2454_v58, %v4620_v7  ;;  %v2483_v48 = vcombine.high %v2461_v24, %v2461_v24  ;;  %v2484_v46 = vcombine.high %v2468_v44, %v2468_v44 }
 0x20e   : > { %v3663_v47 = vrot.slane %v3649_v1, %v4620_v7  ;;  %v2993_v43 = vrot.slane %v2971_v41, %v4620_v7  ;;  %v3000_v63 = vrot.slane %v2972_v57, %v4620_v7  ;;  %v3001_v19 = vcombine.high %v2979_v45, %v2979_v45 }
 0x20f   : > { %v3697_v8 = vcombine.low %v3675_v31, %v3682_v33  ;;  %v2485_v36 = vcombine.high %v2482_v61, %v2482_v61  ;;  %v3002_v55 = vcombine.high %v2986_v52, %v2986_v52  ;;  %v3418_v28 = vadd.f32 %v5077_v11, %v3291_v9 }
 0x210   : > { %v3664_v32 = vcombine.low %v5270_v14, %v3663_v47  ;;  %v3003_v51 = vcombine.high %v2993_v43, %v2993_v43  ;;  %v3004_v26 = vcombine.high %v3000_v63, %v3000_v63  ;;  %v3292_v21 = vadd.f32 %v2993_v43, %v2461_v24 }
 0x211   : > { %v5305_v15 = vrot.slane %v3697_v8, %v4620_v7  ;;  %v3293_v39 = vadd.f32 %v3001_v19, %v2475_v29  ;;  %v3295_v34 = vadd.f32 %v3000_v63, %v2468_v44  ;;  %v3296_v38 = vadd.f32 %v3002_v55, %v2482_v61 }
 0x212   : > { %3920 = vst.msk [vmem:[%s5217_s30 + $0x10] sm:$0xff] %vm1624_vm3, %v3664_v32  ;;  %v3294_v23 = vadd.f32 %v3003_v51, %v2483_v48  ;;  %v3297_v3 = vadd.f32 %v3004_v26, %v2484_v46  ;;  %v3419_v37 = vadd.f32 %v5080_v27, %v3292_v21  ;;  %v2085_v59 = vrot.slane %v5174_v2, 1 }
 0x213   : > { %v3420_v31 = vadd.f32 %v5107_v25, %v3293_v39  ;;  %v3422_v14 = vadd.f32 %v5068_v4, %v3295_v34  ;;  %v3423_v42 = vadd.f32 %v5071_v5, %v3296_v38  ;;  %v2216_v24 = vadd.f32 %v5179_v13, %v5065_v62 }
 0x214   : > { %v3421_v41 = vadd.f32 %v5113_v12, %v3294_v23  ;;  %v3424_v33 = vadd.f32 %v5096_v22, %v3297_v3  ;;  %v3667_v45 = vcombine.low %v3418_v28, %v3419_v37  ;;  %v2086_v58 = vsel %vm2034_vm5, %v2083_v54, %v2085_v59 }
 0x215   : > { %v3714_v44 = vcombine.low %v3422_v14, %v3423_v42  ;;  %v2749_v2 = vadd.f32 %v2086_v58, %v5034_v0  ;;  %v2486_v1 = vcombine.high %v2216_v24, %v2216_v24  ;;  %v2493_v57 = vrot.slane %v2216_v24, %v4620_v7 }
 0x216   : > { %v3668_v52 = vcombine.low %v3420_v31, %v3421_v41  ;;  %v3689_v29 = vrot.slane %v3667_v45, %v4620_v7  ;;  %v2087_v62 = vrot.slane %v5193_v50, 1  ;;  %v5329_v13 = vadd.f32 %v5200_v40, %v5083_v16 }
 0x217   : > { %v3724_v8 = vrot.slane %v3714_v44, %v4620_v7  ;;  %v3005_v60 = vcombine.high %v2749_v2, %v2749_v2  ;;  %v3012_v54 = vrot.slane %v2749_v2, %v4620_v7  ;;  %v2500_v9 = vrot.slane %v2486_v1, %v4620_v7 }
 0x218   : > { %v3696_v0 = vrot.slane %v3668_v52, %v4620_v7  ;;  %v2501_v61 = vcombine.high %v2493_v57, %v2493_v57  ;;  %v2509_v48 = vrot.slane %v2493_v57, %v4620_v7  ;;  %v2088_v47 = vsel %vm2034_vm5, %v2085_v59, %v2087_v62 }
 0x219   : > { %v3019_v50 = vrot.slane %v3005_v60, %v4620_v7  ;;  %v3020_v46 = vcombine.high %v3012_v54, %v3012_v54  ;;  %v3028_v16 = vrot.slane %v3012_v54, %v4620_v7  ;;  %v2502_v40 = vcombine.high %v2500_v9, %v2500_v9 }
 0x21a   : > { %v3698_v43 = vcombine.low %v3689_v29, %v3696_v0  ;;  %v2516_v63 = vrot.slane %v2500_v9, %v4620_v7  ;;  %v2523_v19 = vrot.slane %v2501_v61, %v4620_v7  ;;  %v2531_v55 = vcombine.high %v2509_v48, %v2509_v48 }
 0x21b   : > { %v3021_v32 = vcombine.high %v3019_v50, %v3019_v50  ;;  %v3035_v51 = vrot.slane %v3019_v50, %v4620_v7  ;;  %v3298_v26 = vadd.f32 %v3028_v16, %v2485_v36  ;;  %v2530_v21 = vrot.slane %v2502_v40, %v4620_v7 }
 0x21c   : > { %v3712_v39 = vrot.slane %v3698_v43, %v4620_v7  ;;  %v2532_v34 = vcombine.high %v2516_v63, %v2516_v63  ;;  %v2533_v38 = vcombine.high %v2523_v19, %v2523_v19  ;;  %v3042_v28 = vrot.slane %v3020_v46, %v4620_v7 }
 0x21d   : > { %v3425_v23 = vadd.f32 %v5100_v49, %v3298_v26  ;;  %v2534_v3 = vcombine.high %v2530_v21, %v2530_v21  ;;  %v3049_v37 = vrot.slane %v3021_v32, %v4620_v7  ;;  %v3050_v59 = vcombine.high %v3028_v16, %v3028_v16 }
 0x21e   : > { %v3713_v31 = vcombine.low %v5305_v15, %v3712_v39  ;;  %v3051_v14 = vcombine.high %v3035_v51, %v3035_v51  ;;  %v3052_v42 = vcombine.high %v3042_v28, %v3042_v28  ;;  %v3299_v36 = vadd.f32 %v3042_v28, %v2509_v48 }
 0x21f   : > { %v3715_v24 = vcombine.low %v3424_v33, %v3425_v23  ;;  %v3053_v41 = vcombine.high %v3049_v37, %v3049_v37  ;;  %v3300_v45 = vadd.f32 %v3050_v59, %v2523_v19  ;;  %v3302_v58 = vadd.f32 %v3035_v51, %v2533_v38 }
 0x220   : > { %3921 = vst.msk [vmem:[%s5217_s30 + $0x18] sm:$0xff] %vm1624_vm3, %v3713_v31  ;;  %v3301_v44 = vadd.f32 %v3052_v42, %v2531_v55  ;;  %v3303_v2 = vadd.f32 %v3051_v14, %v2530_v21  ;;  %v3426_v1 = vadd.f32 %v5077_v11, %v3299_v36  ;;  %v5554_v57 = vrot.slane %v5050_v30, 1 }
 0x221   : > { %v3731_v29 = vrot.slane %v3715_v24, %v4620_v7  ;;  %v3304_v15 = vadd.f32 %v3053_v41, %v2532_v34  ;;  %v3427_v60 = vadd.f32 %v5080_v27, %v3300_v45  ;;  %v3429_v33 = vadd.f32 %v5113_v12, %v3302_v58 }
 0x222   : > { %v2104_v52 = vsel %vm2034_vm5, %v2087_v62, %v5554_v57  ;;  %v3428_v54 = vadd.f32 %v5107_v25, %v3301_v44  ;;  %v3430_v9 = vadd.f32 %v5068_v4, %v3303_v2  ;;  %v2750_v0 = vadd.f32 %v2088_v47, %v5036_v10 }
 0x223   : > { %v2751_v61 = vadd.f32 %v2104_v52, %v5039_v17  ;;  %v3746_v48 = vcombine.low %v3724_v8, %v3731_v29  ;;  %v3431_v30 = vadd.f32 %v5071_v5, %v3304_v15  ;;  %v3716_v50 = vcombine.low %v3426_v1, %v3427_v60 }
 0x224   : > { %v2535_v62 = vcombine.high %v5329_v13, %v5329_v13  ;;  %v3717_v46 = vcombine.low %v3428_v54, %v3429_v33  ;;  %v3054_v16 = vcombine.high %v2750_v0, %v2750_v0  ;;  %v3061_v40 = vrot.slane %v2750_v0, %v4620_v7 }
 0x225   : > { %v3102_v43 = vcombine.high %v2751_v61, %v2751_v61  ;;  %v3738_v63 = vrot.slane %v3716_v50, %v4620_v7  ;;  %v3754_v19 = vrot.slane %v3746_v48, %v4620_v7  ;;  %v3763_v55 = vcombine.low %v3430_v9, %v3431_v30 }
 0x226   : > { %v3109_v10 = vrot.slane %v2751_v61, %v4620_v7  ;;  %v3745_v17 = vrot.slane %v3717_v46, %v4620_v7  ;;  %v3068_v8 = vrot.slane %v3054_v16, %v4620_v7  ;;  %v3069_v47 = vcombine.high %v3061_v40, %v3061_v40 }
 0x227   : > { %v3077_v32 = vrot.slane %v3061_v40, %v4620_v7  ;;  %v5372_v51 = vrot.slane %v3763_v55, %v4620_v7  ;;  %v3116_v26 = vrot.slane %v3102_v43, %v4620_v7  ;;  %v2542_v31 = vrot.slane %v5329_v13, %v4620_v7 }
 0x228   : > { %v3117_v21 = vcombine.high %v3109_v10, %v3109_v10  ;;  %v5376_v39 = vrot.slane %v3109_v10, %v4620_v7  ;;  %v3747_v34 = vcombine.low %v3738_v63, %v3745_v17  ;;  %v3070_v38 = vcombine.high %v3068_v8, %v3068_v8 }
 0x229   : > { %v3084_v28 = vrot.slane %v3068_v8, %v4620_v7  ;;  %v3305_v23 = vadd.f32 %v3077_v32, %v2534_v3  ;;  %v3118_v37 = vcombine.high %v3116_v26, %v3116_v26  ;;  %v5380_v59 = vrot.slane %v3116_v26, %v4620_v7 }
 0x22a   : > { %v2549_v14 = vrot.slane %v2535_v62, %v4620_v7  ;;  %v3761_v42 = vrot.slane %v3747_v34, %v4620_v7  ;;  %v3091_v36 = vrot.slane %v3069_v47, %v4620_v7  ;;  %v3098_v24 = vrot.slane %v3070_v38, %v4620_v7 }
 0x22b   : > { %v3099_v41 = vcombine.high %v3077_v32, %v3077_v32  ;;  %v2550_v45 = vcombine.high %v2542_v31, %v2542_v31  ;;  %v2558_v3 = vrot.slane %v2542_v31, %v4620_v7  ;;  %v3432_v13 = vadd.f32 %v5096_v22, %v3305_v23 }
 0x22c   : > { %v2551_v58 = vcombine.high %v2549_v14, %v2549_v14  ;;  %v2565_v44 = vrot.slane %v2549_v14, %v4620_v7  ;;  %v3762_v2 = vcombine.low %v3754_v19, %v3761_v42  ;;  %v3100_v1 = vcombine.high %v3091_v36, %v3091_v36 }
 0x22d   : > { %v3101_v57 = vcombine.high %v3098_v24, %v3098_v24  ;;  %v2572_v52 = vrot.slane %v2550_v45, %v4620_v7  ;;  %v2580_v15 = vcombine.high %v2558_v3, %v2558_v3  ;;  %v3306_v33 = vadd.f32 %v3091_v36, %v2558_v3 }
 0x22e   : > { %v2579_v29 = vrot.slane %v2551_v58, %v4620_v7  ;;  %v2581_v60 = vcombine.high %v2565_v44, %v2565_v44  ;;  %3922 = vst.msk [vmem:[%s5217_s30 + $0x20] sm:$0xff] %vm1624_vm3, %v3762_v2  ;;  %v3310_v54 = vadd.f32 %v3098_v24, %v2565_v44  ;;  %v2226_v9 = vadd.f32 %v5209_v53, %v5088_v18 }
 0x22f   : > { %v3139_v0 = vrot.slane %v3117_v21, %v4620_v7  ;;  %v2582_v61 = vcombine.high %v2572_v52, %v2572_v52  ;;  %v3307_v30 = vadd.f32 %v3099_v41, %v2572_v52  ;;  %v3308_v50 = vadd.f32 %v3100_v1, %v2580_v15 }
 0x230   : > { %v2583_v48 = vcombine.high %v2579_v29, %v2579_v29  ;;  %v3311_v62 = vadd.f32 %v3101_v57, %v2581_v60  ;;  %v3433_v46 = vadd.f32 %v5100_v49, %v3306_v33  ;;  %v3437_v16 = vadd.f32 %v5113_v12, %v3310_v54 }
 0x231   : > { %v2584_v40 = vcombine.high %v2226_v9, %v2226_v9  ;;  %v3309_v43 = vadd.f32 %v3084_v28, %v2582_v61  ;;  %v3434_v19 = vadd.f32 %v5077_v11, %v3307_v30  ;;  %v3435_v55 = vadd.f32 %v5080_v27, %v3308_v50 }
 0x232   : > { %v3312_v63 = vadd.f32 %v5376_v39, %v2583_v48  ;;  %v3438_v18 = vadd.f32 %v5068_v4, %v3311_v62  ;;  %v3764_v53 = vcombine.low %v3432_v13, %v3433_v46  ;;  %v2591_v10 = vrot.slane %v2226_v9, %v4620_v7 }
 0x233   : > { %v2598_v17 = vrot.slane %v2584_v40, %v4620_v7  ;;  %v3436_v8 = vadd.f32 %v5107_v25, %v3309_v43  ;;  %v3765_v32 = vcombine.low %v3434_v19, %v3435_v55  ;;  %v3146_v26 = vrot.slane %v3118_v37, %v4620_v7 }
 0x234   : > { %v3439_v47 = vadd.f32 %v5071_v5, %v3312_v63  ;;  %v3780_v21 = vrot.slane %v3764_v53, %v4620_v7  ;;  %v2599_v34 = vcombine.high %v2591_v10, %v2591_v10  ;;  %v2607_v28 = vrot.slane %v2591_v10, %v4620_v7  ;;  %v5556_v63 = vld [vmem:[#allocation5_spill] sm:$0xff] }
 0x235   : > { %v2600_v38 = vcombine.high %v2598_v17, %v2598_v17  ;;  %v3766_v23 = vcombine.low %v3436_v8, %v3437_v16  ;;  %v3787_v31 = vrot.slane %v3765_v32, %v4620_v7  ;;  %v2614_v42 = vrot.slane %v2598_v17, %v4620_v7 }
 0x236   : > { %v3812_v14 = vcombine.low %v3438_v18, %v3439_v47  ;;  %v3795_v36 = vcombine.low %v5372_v51, %v3780_v21  ;;  %v2621_v24 = vrot.slane %v2599_v34, %v4620_v7  ;;  %v2629_v45 = vcombine.high %v2607_v28, %v2607_v28 }
 0x237   : > { %v2628_v41 = vrot.slane %v2600_v38, %v4620_v7  ;;  %v3794_v37 = vrot.slane %v3766_v23, %v4620_v7  ;;  %v3147_v58 = vcombine.high %v5376_v39, %v5376_v39  ;;  %v3148_v3 = vcombine.high %v5380_v59, %v5380_v59 }
 0x238   : > { %v3149_v44 = vcombine.high %v3139_v0, %v3139_v0  ;;  %v3803_v2 = vrot.slane %v3795_v36, %v4620_v7  ;;  %v2630_v1 = vcombine.high %v2621_v24, %v2621_v24  ;;  %v3313_v13 = vadd.f32 %v3139_v0, %v2607_v28 }
 0x239   : > { %v2631_v57 = vcombine.high %v2628_v41, %v2628_v41  ;;  %v3796_v51 = vcombine.low %v3787_v31, %v3794_v37  ;;  %v3314_v52 = vadd.f32 %v3147_v58, %v2621_v24  ;;  %v3317_v15 = vadd.f32 %v3146_v26, %v2614_v42 }
 0x23a   : > { %v3315_v29 = vadd.f32 %v3149_v44, %v2629_v45  ;;  %v3316_v60 = vadd.f32 %v5380_v59, %v2630_v1  ;;  %v3318_v33 = vadd.f32 %v3148_v3, %v2628_v41  ;;  %v3440_v39 = vadd.f32 %v5096_v22, %v3313_v13 }
 0x23b   : > { %v3319_v54 = vadd.f32 %v5117_v35, %v2631_v57  ;;  %v3810_v9 = vrot.slane %v3796_v51, %v4620_v7  ;;  %v3441_v61 = vadd.f32 %v5100_v49, %v3314_v52  ;;  %v3444_v0 = vadd.f32 %v5107_v25, %v3317_v15 }
 0x23c   : > { %v3442_v48 = vadd.f32 %v5077_v11, %v3315_v29  ;;  %v3443_v30 = vadd.f32 %v5080_v27, %v3316_v60  ;;  %v3445_v50 = vadd.f32 %v5113_v12, %v3318_v33  ;;  %v2231_v59 = vadd.f32 %v5223_v20, %v5030_v56  ;;  %v5558_v20 = vld [vmem:[#allocation6_spill] sm:$0xff] }
 0x23d   : > { %v5555_v62 = vcombine.high %v5074_v6, %v5074_v6  ;;  %v3811_v16 = vcombine.low %v3803_v2, %v3810_v9  ;;  %v3813_v40 = vcombine.low %v3440_v39, %v3441_v61  ;;  %v3822_v43 = vrot.slane %v3812_v14, %v4620_v7 }
 0x23e   : > { %v5557_v19 = vcombine.high %v5556_v63, %v5556_v63  ;;  %v3814_v18 = vcombine.low %v3442_v48, %v3443_v30  ;;  %v3815_v53 = vcombine.low %v3444_v0, %v3445_v50  ;;  %v2632_v10 = vcombine.high %v2231_v59, %v2231_v59 }
 0x23f   : > { %v3187_v46 = vrot.slane %v5555_v62, %v4620_v7  ;;  %v2639_v17 = vrot.slane %v2231_v59, %v4620_v7  ;;  %3923 = vst.msk [vmem:[%s5217_s30 + $0x28] sm:$0xff] %vm1624_vm3, %v3811_v16  ;;  %v3829_v56 = vrot.slane %v3813_v40, %v4620_v7  ;;  %v3195_v6 = vcombine.high %v5117_v35, %v5117_v35 }
 0x240   : > { %v3194_v55 = vrot.slane %v5557_v19, %v4620_v7  ;;  %v3196_v8 = vcombine.high %v5558_v20, %v5558_v20  ;;  %v3836_v47 = vrot.slane %v3814_v18, %v4620_v7  ;;  %v3843_v32 = vrot.slane %v3815_v53, %v4620_v7 }
 0x241   : > { %v2646_v26 = vrot.slane %v2632_v10, %v4620_v7  ;;  %v2647_v21 = vcombine.high %v2639_v17, %v2639_v17  ;;  %v3844_v34 = vcombine.low %v3822_v43, %v3829_v56  ;;  %v2655_v38 = vrot.slane %v2639_v17, %v4620_v7 }
 0x242   : > { %v3197_v28 = vcombine.high %v3187_v46, %v3187_v46  ;;  %v3198_v23 = vcombine.high %v3194_v55, %v3194_v55  ;;  %v3845_v31 = vcombine.low %v3836_v47, %v3843_v32  ;;  %v3446_v45 = vadd.f32 %v5068_v4, %v3319_v54 }
 0x243   : > { %v2648_v14 = vcombine.high %v2646_v26, %v2646_v26  ;;  %v2662_v42 = vrot.slane %v2646_v26, %v4620_v7  ;;  %v2669_v35 = vrot.slane %v2647_v21, %v4620_v7  ;;  %v3852_v36 = vrot.slane %v3844_v34, %v4620_v7 }
 0x244   : > { %v2677_v24 = vcombine.high %v2655_v38, %v2655_v38  ;;  %v3320_v41 = vadd.f32 %v3187_v46, %v2655_v38  ;;  %v3859_v37 = vrot.slane %v3845_v31, %v4620_v7 }
 0x245   : > { %v2676_v58 = vrot.slane %v2648_v14, %v4620_v7  ;;  %v2678_v3 = vcombine.high %v2662_v42, %v2662_v42  ;;  %v2679_v44 = vcombine.high %v2669_v35, %v2669_v35  ;;  %v3321_v2 = vadd.f32 %v3195_v6, %v2669_v35 }
 0x246   : > { %v3322_v1 = vadd.f32 %v3197_v28, %v2677_v24  ;;  %v3324_v57 = vadd.f32 %v3194_v55, %v2662_v42  ;;  %v3447_v13 = vadd.f32 %v5071_v5, %v3320_v41  ;;  %v3860_v51 = vcombine.low %v3852_v36, %v3859_v37 }
 0x247   : > { %v3323_v52 = vadd.f32 %v5558_v20, %v2679_v44  ;;  %v3325_v29 = vadd.f32 %v3196_v8, %v2676_v58  ;;  %v3326_v15 = vadd.f32 %v3198_v23, %v2678_v3  ;;  %v3448_v60 = vadd.f32 %v5096_v22, %v3321_v2 }
 0x248   : > { %v3449_v4 = vadd.f32 %v5100_v49, %v3322_v1  ;;  %v3861_v33 = vcombine.low %v3446_v45, %v3447_v13  ;;  %3924 = vst.msk [vmem:[%s5217_s30 + $0x30] sm:$0xff] %vm1624_vm3, %v3860_v51  ;;  %v3451_v39 = vadd.f32 %v5080_v27, %v3324_v57 }
 0x249   : > { %v3450_v54 = vadd.f32 %v5077_v11, %v3323_v52  ;;  %v3452_v5 = vadd.f32 %v5107_v25, %v3325_v29  ;;  %v3453_v9 = vadd.f32 %v5113_v12, %v3326_v15 }
 0x24a   : > { %v3862_v61 = vcombine.low %v3448_v60, %v3449_v4  ;;  %v3871_v48 = vrot.slane %v3861_v33, %v4620_v7 }
 0x24b   : > { %v3863_v22 = vcombine.low %v3450_v54, %v3451_v39  ;;  %v3864_v49 = vcombine.low %v3452_v5, %v3453_v9 }
 0x24c   : > { %v3878_v0 = vrot.slane %v3862_v61, %v4620_v7 }
 0x24d   : > { %v3885_v30 = vrot.slane %v3863_v22, %v4620_v7  ;;  %v3892_v11 = vrot.slane %v3864_v49, %v4620_v7 }
 0x24e   : > { %v3893_v50 = vcombine.low %v3871_v48, %v3878_v0 }
 0x24f   : > { %v3894_v27 = vcombine.low %v3885_v30, %v3892_v11 }
 0x250   : > { %v3901_v25 = vrot.slane %v3893_v50, %v4620_v7 }
 0x251   : > { %v3908_v12 = vrot.slane %v3894_v27, %v4620_v7 }
 0x253   : > { %v3909_v59 = vcombine.low %v3901_v25, %v3908_v12 }
 0x255   : > { %3925 = vst.msk [vmem:[%s5217_s30 + $0x38] sm:$0xff] %vm1624_vm3, %v3909_v59 }
 0x256   : > { %4438 = shalt.err (!%p4435_p5)
}
 0x257   : > { %s4439_s19 = scalar_lea.hbm %s5481_s16, 1024  ;;  %s4443_s28 = scalar_lea.hbm %s5541_s6, 2048 }
 0x258   : > { %p4440_p6 = scmp.ne.s32.totalorder %s5481_s16, %s4439_s19  ;;  %p4444_p10 = scmp.lt.u32.totalorder %s5481_s16, %s5541_s6 }
 0x259   : > { %p4445_p11 = scmp.lt.u32.totalorder %s4443_s28, %s4439_s19  ;;  %p4447_p13 = scmp.lt.u32.totalorder %s4439_s19, %s5481_s16 }
 0x25a   : > { %p4441_p7 = pnand %p4440_p6, %p4588_p4 }
 0x25b   : > { %p4446_p12 = por %p4445_p11, %p4444_p10 }
 0x25c   : > { %p4442_p9 = pneg %p4441_p7 }
 0x25d   : > { %p4448_p0 = por %p4447_p13, %p4446_p12 }
 0x25f   : > { %p4449_p1 = pnand %p4448_p0, %p4442_p9 }
 0x261   : > { %4452 = shalt.err (!%p4449_p1)
}
 0x262   : > { %s4511_s12 = smov 128   ;;  %s4512_s15 = smov 8  }
 0x263   : > { %4354 = dma.vmem_to_hbm [thread:$0]  (%p4588_p4), %s5483_s11, 1024, %s5481_s16, %s5489_s24, %s4511_s12, %s4511_s12, %s4512_s15  }
 0x264 PF: > { %p4361_p2 = scmp.ge.s32.totalorder %s4503_s26, 2  ;;  %s3957_s13 = sand.u32 1, %s4483_s21  }
 0x265   : > { %s3958_s14 = scalar_lea.sflag [#allocation3], %s3957_s13 }
 0x266   : > { %p4357_p3 = pnand %p4361_p2, %p4595_p8 }
 0x268   : > { %4478 = dma.done.wait (!%p4357_p3), %s3958_s14, 1024  }
 0x269   : > { %4480 = vsyncadd (!%p4357_p3), %s3958_s14, 4294966272  ;;  %s19_s26 = sadd.s32 1, %s4503_s26   ;;  %s5559_s21 = smov %s4487_s22 }
 0x26a   : > { %p16_p5 = scmp.ge.s32.totalorder %s19_s26, 4   ;;  %s5560_s22 = smov %s4491_s23 }
 0x26b   : > { %s5561_s23 = smov %s4601_s10  ;;  %s5562_s24 = smov %s4499_s25 }
 0x26c   : > { %s5563_s25 = smov %s5565_s29  ;;  %18 = sbr.rel (!%p16_p5) target bundleno = 4 (0x4), region = 84 }
 0x273   :  { %3963 = vsyncpa [#allocation3], 1 }
 0x274   :  { %3965 = vsyncpa [#allocation3 + $0x1], 1 }

</bundles_post_ra>
